<compile_context>
chip_gen: v6e
topology: v6e:2x2x1
jax: 0.10.0
libtpu: 0.0.40
codegen_flags: <defaults>
</compile_context>

<pallas_src>
import functools
import math

import numpy as np
import jax
import jax.numpy as jnp
from jax import lax
from jax.experimental import pallas as pl
from jax.experimental.pallas import tpu as pltpu

LEAK = 0.2
BN_EPS = 0.8  # nn.BatchNorm2d(C, 0.8) -> second positional arg is eps


def _conv_out(h):
    # 3x3 conv, stride 2, pad 1
    return (h + 2 - 3) // 2 + 1


def _tap_gather(hi, wi, ho, wo):
    """T[t, o, i] = 1 iff unpadded input pixel i feeds tap t=(kh*3+kw) of output o
    for a 3x3 / stride-2 / pad-1 conv (spatial indices flattened row-major)."""
    t = np.zeros((9, ho * wo, hi * wi), np.float32)
    for kh in range(3):
        for kw in range(3):
            tap = kh * 3 + kw
            for oi in range(ho):
                for oj in range(wo):
                    ii = 2 * oi + kh - 1
                    jj = 2 * oj + kw - 1
                    if 0 <= ii < hi and 0 <= jj < wi:
                        t[tap, oi * wo + oj, ii * wi + jj] = 1.0
    return t


# --------------------------- the single fused kernel ---------------------------------
def _disc_kernel(p1_ref, w1_ref, b1_ref,
                 t2_ref, w2_ref, b2_ref, s2_ref, h2_ref,
                 t3_ref, w3_ref, b3_ref, s3_ref, h3_ref,
                 t4_ref, w4_ref, b4_ref, s4_ref, h4_ref,
                 wfc_ref, bfc_ref, out_ref):
    # ---- layer 1: wrapper-side im2col patches -> one matmul (no BN after conv1)
    y = jnp.dot(p1_ref[0], w1_ref[...], preferred_element_type=jnp.float32)
    y = y + b1_ref[...]
    y = jnp.where(y >= 0, y, LEAK * y)                      # (M1, 16)  f32
    # TODO(synk): Dropout2d(0.25) training-mode channel dropout not modeled
    # (inference-mode identity); BN uses eval-mode running stats folded to scale/shift.

    def conv_block(y_in, t_ref, w_ref, b_ref, sc_ref, sh_ref):
        m_out = t_ref.shape[1]
        c_out = w_ref.shape[2]
        yb = y_in.astype(jnp.bfloat16)
        acc = jnp.zeros((m_out, c_out), jnp.float32)
        for tap in range(9):                                # static 3x3-tap unroll
            g = jnp.dot(t_ref[tap], yb,                     # row gather via 0/1 matmul
                        preferred_element_type=jnp.float32)
            acc = acc + jnp.dot(g.astype(jnp.bfloat16), w_ref[tap],
                                preferred_element_type=jnp.float32)
        acc = acc + b_ref[...]
        acc = jnp.where(acc >= 0, acc, LEAK * acc)          # LeakyReLU(0.2)
        return acc * sc_ref[...] + sh_ref[...]              # eval-mode BN affine

    y = conv_block(y, t2_ref, w2_ref, b2_ref, s2_ref, h2_ref)   # (M2, 32)
    y = conv_block(y, t3_ref, w3_ref, b3_ref, s3_ref, h3_ref)   # (M3, 64)
    y = conv_block(y, t4_ref, w4_ref, b4_ref, s4_ref, h4_ref)   # (M4, 128)

    # ---- FC head (out_features = 1): VPU multiply + reduction, stable sigmoid (EUP)
    z = jnp.sum(y * wfc_ref[...], axis=1, keepdims=True)    # (M4, 1)
    z = jnp.sum(z, axis=0, keepdims=True) + bfc_ref[...]    # (1, 1)
    pos = 1.0 / (1.0 + jnp.exp(-z))
    ez = jnp.exp(z)
    neg = ez / (1.0 + ez)
    out_ref[0] = jnp.where(z >= 0, pos, neg).astype(out_ref.dtype)


# --------------------------- wrapper --------------------------------------------------
def discriminator_forward(params, img_nchw):
    x = jnp.transpose(img_nchw, (0, 2, 3, 1)).astype(jnp.float32)   # NCHW -> NHWC
    n_b, cin = x.shape[0], x.shape[3]
    hs, ws = [x.shape[1]], [x.shape[2]]
    for _ in range(4):
        hs.append(_conv_out(hs[-1]))
        ws.append(_conv_out(ws[-1]))

    # Layer-1 im2col in JAX (tiny: 9*Cin columns of the raw image only).
    xp = jnp.pad(x, ((0, 0), (1, 1), (1, 1), (0, 0)))
    cols = []
    for kh in range(3):
        for kw in range(3):
            cols.append(xp[:, kh:kh + 2 * hs[1]:2, kw:kw + 2 * ws[1]:2, :])
    m1 = hs[1] * ws[1]
    k1 = 9 * cin
    k1p = -(-k1 // 8) * 8                                    # align contraction dim
    p1 = jnp.stack(cols, axis=3).reshape(n_b, m1, k1)
    p1 = jnp.pad(p1, ((0, 0), (0, 0), (0, k1p - k1))).astype(jnp.bfloat16)

    w1 = jnp.pad(params["conv0_w"].reshape(k1, 16),
                 ((0, k1p - k1), (0, 0))).astype(jnp.bfloat16)

    chans = [cin, 16, 32, 64, 128]
    args = [p1, w1, params["conv0_b"].reshape(1, 16)]
    in_specs = [
        pl.BlockSpec((1, m1, k1p), lambda b: (b, 0, 0)),
        pl.BlockSpec((k1p, 16), lambda b: (0, 0)),
        pl.BlockSpec((1, 16), lambda b: (0, 0)),
    ]
    for i in (1, 2, 3):
        t = jnp.asarray(_tap_gather(hs[i], ws[i], hs[i + 1], ws[i + 1]), jnp.bfloat16)
        w = params[f"conv{i}_w"].reshape(9, chans[i], chans[i + 1]).astype(jnp.bfloat16)
        b = params[f"conv{i}_b"].reshape(1, chans[i + 1])
        sc = params[f"bn{i}_scale"].reshape(1, chans[i + 1])
        sh = params[f"bn{i}_shift"].reshape(1, chans[i + 1])
        args += [t, w, b, sc, sh]
        in_specs += [
            pl.BlockSpec(t.shape, lambda b: (0, 0, 0)),
            pl.BlockSpec(w.shape, lambda b: (0, 0, 0)),
            pl.BlockSpec(b.shape, lambda b: (0, 0)),
            pl.BlockSpec(sc.shape, lambda b: (0, 0)),
            pl.BlockSpec(sh.shape, lambda b: (0, 0)),
        ]

    nn_sp = hs[4] * ws[4]
    # PyTorch flatten order is c*(H*W) + h*W + w; kernel activation is (h*W+w, c).
    wfc = params["fc_w"][:, 0].reshape(128, nn_sp).T         # (H4*W4, 128)  f32
    bfc = params["fc_b"].reshape(1, 1)
    args += [wfc, bfc]
    in_specs += [pl.BlockSpec(wfc.shape, lambda b: (0, 0)),
                 pl.BlockSpec(bfc.shape, lambda b: (0, 0))]

    out = pl.pallas_call(
        _disc_kernel,
        out_shape=jax.ShapeDtypeStruct((n_b, 1, 1), jnp.float32),
        grid=(n_b,),
        in_specs=in_specs,
        out_specs=pl.BlockSpec((1, 1, 1), lambda b: (b, 0, 0)),
        compiler_params=pltpu.CompilerParams(
            dimension_semantics=("parallel",)),   # batch split across v7x's 2 TCs
    )(*args)
    return out.reshape(n_b, 1)


# --------------------------- pure-JAX reference (for self-check) ----------------------
def discriminator_reference(params, img_nchw):
    x = jnp.transpose(img_nchw, (0, 2, 3, 1)).astype(jnp.float32)
    for i in range(4):
        y = lax.conv_general_dilated(
            x, params[f"conv{i}_w"], window_strides=(2, 2),
            padding=((1, 1), (1, 1)),
            dimension_numbers=("NHWC", "HWIO", "NHWC"))
        y = y + params[f"conv{i}_b"]
        y = jnp.where(y >= 0, y, LEAK * y)
        if i >= 1:
            y = y * params[f"bn{i}_scale"] + params[f"bn{i}_shift"]
        x = y
    flat = jnp.transpose(x, (0, 3, 1, 2)).reshape(x.shape[0], -1)
    z = flat @ params["fc_w"] + params["fc_b"]
    return jax.nn.sigmoid(z)


# --------------------------- parameters (deterministic synthetic init) ----------------
def init_params(key, channels, img_size):
    chans = [channels, 16, 32, 64, 128]
    params = {}
    for i in range(4):
        key, k1, k2 = jax.random.split(key, 3)
        cin, cout = chans[i], chans[i + 1]
        bound = 1.0 / math.sqrt(cin * 9)
        params[f"conv{i}_w"] = jax.random.uniform(
            k1, (3, 3, cin, cout), jnp.float32, -bound, bound)
        params[f"conv{i}_b"] = jax.random.uniform(
            k2, (cout,), jnp.float32, -bound, bound)
        if i >= 1:  # BatchNorm2d(C, 0.8) follows conv2/3/4 activations only
            key, k3, k4 = jax.random.split(key, 3)
            gamma = 1.0 + 0.1 * jax.random.normal(k3, (cout,), jnp.float32)
            beta = 0.1 * jax.random.normal(k4, (cout,), jnp.float32)
            running_mean = jnp.zeros((cout,), jnp.float32)
            running_var = jnp.ones((cout,), jnp.float32)
            scale = gamma / jnp.sqrt(running_var + BN_EPS)
            params[f"bn{i}_scale"] = scale
            params[f"bn{i}_shift"] = beta - running_mean * scale

    n = img_size // 16
    fin = 128 * n * n
    key, k5, k6 = jax.random.split(key, 3)
    bound = 1.0 / math.sqrt(fin)
    params["fc_w"] = jax.random.uniform(k5, (fin, 1), jnp.float32, -bound, bound)
    params["fc_b"] = jax.random.uniform(k6, (1,), jnp.float32, -bound, bound)
    return params


if __name__ == "__main__":
    batch, channels, img_size = 2, 1, 16   # img_size // 16 == 1, matching the module
    key = jax.random.PRNGKey(0)
    kx, kp = jax.random.split(key)
    img = jax.random.normal(kx, (batch, channels, img_size, img_size), jnp.float32)
    params = init_params(kp, channels, img_size)

    fwd = jax.jit(functools.partial(discriminator_forward, params))
    out = jax.block_until_ready(fwd(img))
    assert out.shape == (batch, 1)
    assert bool(jnp.all((out >= 0.0) & (out <= 1.0)))

    ref = discriminator_reference(params, img)
    assert bool(jnp.allclose(out, ref, atol=2e-2)), (out, ref)
    print("KERNEL_OK")
</pallas_src>

<mosaic_0001>
module attributes {stable_mosaic.version = 11 : i64} {
  func.func @_disc_kernel(%arg0: i32, %arg1: memref<1x64x16xbf16, #tpu.memory_space<vmem>>, %arg2: memref<16x16xbf16, #tpu.memory_space<vmem>>, %arg3: memref<1x16xf32, #tpu.memory_space<vmem>>, %arg4: memref<9x16x64xbf16, #tpu.memory_space<vmem>>, %arg5: memref<9x16x32xbf16, #tpu.memory_space<vmem>>, %arg6: memref<1x32xf32, #tpu.memory_space<vmem>>, %arg7: memref<1x32xf32, #tpu.memory_space<vmem>>, %arg8: memref<1x32xf32, #tpu.memory_space<vmem>>, %arg9: memref<9x4x16xbf16, #tpu.memory_space<vmem>>, %arg10: memref<9x32x64xbf16, #tpu.memory_space<vmem>>, %arg11: memref<1x64xf32, #tpu.memory_space<vmem>>, %arg12: memref<1x64xf32, #tpu.memory_space<vmem>>, %arg13: memref<1x64xf32, #tpu.memory_space<vmem>>, %arg14: memref<9x1x4xbf16, #tpu.memory_space<vmem>>, %arg15: memref<9x64x128xbf16, #tpu.memory_space<vmem>>, %arg16: memref<1x128xf32, #tpu.memory_space<vmem>>, %arg17: memref<1x128xf32, #tpu.memory_space<vmem>>, %arg18: memref<1x128xf32, #tpu.memory_space<vmem>>, %arg19: memref<1x128xf32, #tpu.memory_space<vmem>>, %arg20: memref<1x1xf32, #tpu.memory_space<vmem>>, %arg21: memref<1x1x1xf32, #tpu.memory_space<vmem>>) attributes {dimension_semantics = [#tpu.dimension_semantics<parallel>], iteration_bounds = array<i64: 2>, scalar_prefetch = 0 : i64, scratch_operands = 0 : i64, tpu.core_type = #tpu.core_type<tc>, window_params = [{transform_indices = @transform_0, window_bounds = array<i64: 1, 64, 16>}, {pipeline_mode = #tpu.pipeline_mode<synchronous>, transform_indices = @transform_1, window_bounds = array<i64: 16, 16>}, {pipeline_mode = #tpu.pipeline_mode<synchronous>, transform_indices = @transform_2, window_bounds = array<i64: 1, 16>}, {pipeline_mode = #tpu.pipeline_mode<synchronous>, transform_indices = @transform_3, window_bounds = array<i64: 9, 16, 64>}, {pipeline_mode = #tpu.pipeline_mode<synchronous>, transform_indices = @transform_4, window_bounds = array<i64: 9, 16, 32>}, {pipeline_mode = #tpu.pipeline_mode<synchronous>, transform_indices = @transform_5, window_bounds = array<i64: 1, 32>}, {pipeline_mode = #tpu.pipeline_mode<synchronous>, transform_indices = @transform_6, window_bounds = array<i64: 1, 32>}, {pipeline_mode = #tpu.pipeline_mode<synchronous>, transform_indices = @transform_7, window_bounds = array<i64: 1, 32>}, {pipeline_mode = #tpu.pipeline_mode<synchronous>, transform_indices = @transform_8, window_bounds = array<i64: 9, 4, 16>}, {pipeline_mode = #tpu.pipeline_mode<synchronous>, transform_indices = @transform_9, window_bounds = array<i64: 9, 32, 64>}, {pipeline_mode = #tpu.pipeline_mode<synchronous>, transform_indices = @transform_10, window_bounds = array<i64: 1, 64>}, {pipeline_mode = #tpu.pipeline_mode<synchronous>, transform_indices = @transform_11, window_bounds = array<i64: 1, 64>}, {pipeline_mode = #tpu.pipeline_mode<synchronous>, transform_indices = @transform_12, window_bounds = array<i64: 1, 64>}, {pipeline_mode = #tpu.pipeline_mode<synchronous>, transform_indices = @transform_13, window_bounds = array<i64: 9, 1, 4>}, {pipeline_mode = #tpu.pipeline_mode<synchronous>, transform_indices = @transform_14, window_bounds = array<i64: 9, 64, 128>}, {pipeline_mode = #tpu.pipeline_mode<synchronous>, transform_indices = @transform_15, window_bounds = array<i64: 1, 128>}, {pipeline_mode = #tpu.pipeline_mode<synchronous>, transform_indices = @transform_16, window_bounds = array<i64: 1, 128>}, {pipeline_mode = #tpu.pipeline_mode<synchronous>, transform_indices = @transform_17, window_bounds = array<i64: 1, 128>}, {pipeline_mode = #tpu.pipeline_mode<synchronous>, transform_indices = @transform_18, window_bounds = array<i64: 1, 128>}, {pipeline_mode = #tpu.pipeline_mode<synchronous>, transform_indices = @transform_19, window_bounds = array<i64: 1, 1>}, {transform_indices = @transform_20, window_bounds = array<i64: 1, 1, 1>}]} {
    %c0 = arith.constant 0 : index
    %c0_0 = arith.constant 0 : index
    %c0_1 = arith.constant 0 : index
    %0 = vector.load %arg1[%c0, %c0_0, %c0_1] : memref<1x64x16xbf16, #tpu.memory_space<vmem>>, vector<1x64x16xbf16>
    %1 = vector.shape_cast %0 : vector<1x64x16xbf16> to vector<64x16xbf16>
    %c0_2 = arith.constant 0 : index
    %c0_3 = arith.constant 0 : index
    %2 = vector.load %arg2[%c0_2, %c0_3] : memref<16x16xbf16, #tpu.memory_space<vmem>>, vector<16x16xbf16>
    %cst = arith.constant dense<0.000000e+00> : vector<64x16xf32>
    %3 = tpu.matmul %1, %2, %cst {dimension_numbers = #tpu.dot_dimension_numbers<[1], [0], [0], [1], [0, 0, 1, 1], [], []>} : vector<64x16xbf16>, vector<16x16xbf16>, vector<64x16xf32> -> vector<64x16xf32>
    %c0_4 = arith.constant 0 : index
    %c0_5 = arith.constant 0 : index
    %4 = vector.load %arg3[%c0_4, %c0_5] : memref<1x16xf32, #tpu.memory_space<vmem>>, vector<1x16xf32>
    %5 = vector.broadcast %4 : vector<1x16xf32> to vector<64x16xf32>
    %6 = arith.addf %3, %5 : vector<64x16xf32>
    %cst_6 = arith.constant 0.000000e+00 : f32
    %7 = vector.broadcast %cst_6 : f32 to vector<64x16xf32>
    %8 = arith.cmpf oge, %6, %7 : vector<64x16xf32>
    %cst_7 = arith.constant 2.000000e-01 : f32
    %9 = vector.broadcast %cst_7 : f32 to vector<64x16xf32>
    %10 = arith.mulf %9, %6 : vector<64x16xf32>
    %11 = arith.select %8, %6, %10 : vector<64x16xi1>, vector<64x16xf32>
    %12 = arith.truncf %11 : vector<64x16xf32> to vector<64x16xbf16>
    %cst_8 = arith.constant 0.000000e+00 : f32
    %13 = vector.broadcast %cst_8 : f32 to vector<16x32xf32>
    %c0_9 = arith.constant 0 : index
    %c0_10 = arith.constant 0 : index
    %c0_11 = arith.constant 0 : index
    %14 = vector.load %arg4[%c0_9, %c0_10, %c0_11] : memref<9x16x64xbf16, #tpu.memory_space<vmem>>, vector<1x16x64xbf16>
    %15 = vector.shape_cast %14 : vector<1x16x64xbf16> to vector<16x64xbf16>
    %cst_12 = arith.constant dense<0.000000e+00> : vector<16x16xf32>
    %16 = tpu.matmul %15, %12, %cst_12 {dimension_numbers = #tpu.dot_dimension_numbers<[1], [0], [0], [1], [0, 0, 1, 1], [], []>} : vector<16x64xbf16>, vector<64x16xbf16>, vector<16x16xf32> -> vector<16x16xf32>
    %17 = arith.truncf %16 : vector<16x16xf32> to vector<16x16xbf16>
    %c0_13 = arith.constant 0 : index
    %c0_14 = arith.constant 0 : index
    %c0_15 = arith.constant 0 : index
    %18 = vector.load %arg5[%c0_13, %c0_14, %c0_15] : memref<9x16x32xbf16, #tpu.memory_space<vmem>>, vector<1x16x32xbf16>
    %19 = vector.shape_cast %18 : vector<1x16x32xbf16> to vector<16x32xbf16>
    %cst_16 = arith.constant dense<0.000000e+00> : vector<16x32xf32>
    %20 = tpu.matmul %17, %19, %cst_16 {dimension_numbers = #tpu.dot_dimension_numbers<[1], [0], [0], [1], [0, 0, 1, 1], [], []>} : vector<16x16xbf16>, vector<16x32xbf16>, vector<16x32xf32> -> vector<16x32xf32>
    %21 = arith.addf %13, %20 : vector<16x32xf32>
    %c1 = arith.constant 1 : index
    %c0_17 = arith.constant 0 : index
    %c0_18 = arith.constant 0 : index
    %22 = vector.load %arg4[%c1, %c0_17, %c0_18] : memref<9x16x64xbf16, #tpu.memory_space<vmem>>, vector<1x16x64xbf16>
    %23 = vector.shape_cast %22 : vector<1x16x64xbf16> to vector<16x64xbf16>
    %cst_19 = arith.constant dense<0.000000e+00> : vector<16x16xf32>
    %24 = tpu.matmul %23, %12, %cst_19 {dimension_numbers = #tpu.dot_dimension_numbers<[1], [0], [0], [1], [0, 0, 1, 1], [], []>} : vector<16x64xbf16>, vector<64x16xbf16>, vector<16x16xf32> -> vector<16x16xf32>
    %25 = arith.truncf %24 : vector<16x16xf32> to vector<16x16xbf16>
    %c1_20 = arith.constant 1 : index
    %c0_21 = arith.constant 0 : index
    %c0_22 = arith.constant 0 : index
    %26 = vector.load %arg5[%c1_20, %c0_21, %c0_22] : memref<9x16x32xbf16, #tpu.memory_space<vmem>>, vector<1x16x32xbf16>
    %27 = vector.shape_cast %26 : vector<1x16x32xbf16> to vector<16x32xbf16>
    %cst_23 = arith.constant dense<0.000000e+00> : vector<16x32xf32>
    %28 = tpu.matmul %25, %27, %cst_23 {dimension_numbers = #tpu.dot_dimension_numbers<[1], [0], [0], [1], [0, 0, 1, 1], [], []>} : vector<16x16xbf16>, vector<16x32xbf16>, vector<16x32xf32> -> vector<16x32xf32>
    %29 = arith.addf %21, %28 : vector<16x32xf32>
    %c2 = arith.constant 2 : index
    %c0_24 = arith.constant 0 : index
    %c0_25 = arith.constant 0 : index
    %30 = vector.load %arg4[%c2, %c0_24, %c0_25] : memref<9x16x64xbf16, #tpu.memory_space<vmem>>, vector<1x16x64xbf16>
    %31 = vector.shape_cast %30 : vector<1x16x64xbf16> to vector<16x64xbf16>
    %cst_26 = arith.constant dense<0.000000e+00> : vector<16x16xf32>
    %32 = tpu.matmul %31, %12, %cst_26 {dimension_numbers = #tpu.dot_dimension_numbers<[1], [0], [0], [1], [0, 0, 1, 1], [], []>} : vector<16x64xbf16>, vector<64x16xbf16>, vector<16x16xf32> -> vector<16x16xf32>
    %33 = arith.truncf %32 : vector<16x16xf32> to vector<16x16xbf16>
    %c2_27 = arith.constant 2 : index
    %c0_28 = arith.constant 0 : index
    %c0_29 = arith.constant 0 : index
    %34 = vector.load %arg5[%c2_27, %c0_28, %c0_29] : memref<9x16x32xbf16, #tpu.memory_space<vmem>>, vector<1x16x32xbf16>
    %35 = vector.shape_cast %34 : vector<1x16x32xbf16> to vector<16x32xbf16>
    %cst_30 = arith.constant dense<0.000000e+00> : vector<16x32xf32>
    %36 = tpu.matmul %33, %35, %cst_30 {dimension_numbers = #tpu.dot_dimension_numbers<[1], [0], [0], [1], [0, 0, 1, 1], [], []>} : vector<16x16xbf16>, vector<16x32xbf16>, vector<16x32xf32> -> vector<16x32xf32>
    %37 = arith.addf %29, %36 : vector<16x32xf32>
    %c3 = arith.constant 3 : index
    %c0_31 = arith.constant 0 : index
    %c0_32 = arith.constant 0 : index
    %38 = vector.load %arg4[%c3, %c0_31, %c0_32] : memref<9x16x64xbf16, #tpu.memory_space<vmem>>, vector<1x16x64xbf16>
    %39 = vector.shape_cast %38 : vector<1x16x64xbf16> to vector<16x64xbf16>
    %cst_33 = arith.constant dense<0.000000e+00> : vector<16x16xf32>
    %40 = tpu.matmul %39, %12, %cst_33 {dimension_numbers = #tpu.dot_dimension_numbers<[1], [0], [0], [1], [0, 0, 1, 1], [], []>} : vector<16x64xbf16>, vector<64x16xbf16>, vector<16x16xf32> -> vector<16x16xf32>
    %41 = arith.truncf %40 : vector<16x16xf32> to vector<16x16xbf16>
    %c3_34 = arith.constant 3 : index
    %c0_35 = arith.constant 0 : index
    %c0_36 = arith.constant 0 : index
    %42 = vector.load %arg5[%c3_34, %c0_35, %c0_36] : memref<9x16x32xbf16, #tpu.memory_space<vmem>>, vector<1x16x32xbf16>
    %43 = vector.shape_cast %42 : vector<1x16x32xbf16> to vector<16x32xbf16>
    %cst_37 = arith.constant dense<0.000000e+00> : vector<16x32xf32>
    %44 = tpu.matmul %41, %43, %cst_37 {dimension_numbers = #tpu.dot_dimension_numbers<[1], [0], [0], [1], [0, 0, 1, 1], [], []>} : vector<16x16xbf16>, vector<16x32xbf16>, vector<16x32xf32> -> vector<16x32xf32>
    %45 = arith.addf %37, %44 : vector<16x32xf32>
    %c4 = arith.constant 4 : index
    %c0_38 = arith.constant 0 : index
    %c0_39 = arith.constant 0 : index
    %46 = vector.load %arg4[%c4, %c0_38, %c0_39] : memref<9x16x64xbf16, #tpu.memory_space<vmem>>, vector<1x16x64xbf16>
    %47 = vector.shape_cast %46 : vector<1x16x64xbf16> to vector<16x64xbf16>
    %cst_40 = arith.constant dense<0.000000e+00> : vector<16x16xf32>
    %48 = tpu.matmul %47, %12, %cst_40 {dimension_numbers = #tpu.dot_dimension_numbers<[1], [0], [0], [1], [0, 0, 1, 1], [], []>} : vector<16x64xbf16>, vector<64x16xbf16>, vector<16x16xf32> -> vector<16x16xf32>
    %49 = arith.truncf %48 : vector<16x16xf32> to vector<16x16xbf16>
    %c4_41 = arith.constant 4 : index
    %c0_42 = arith.constant 0 : index
    %c0_43 = arith.constant 0 : index
    %50 = vector.load %arg5[%c4_41, %c0_42, %c0_43] : memref<9x16x32xbf16, #tpu.memory_space<vmem>>, vector<1x16x32xbf16>
    %51 = vector.shape_cast %50 : vector<1x16x32xbf16> to vector<16x32xbf16>
    %cst_44 = arith.constant dense<0.000000e+00> : vector<16x32xf32>
    %52 = tpu.matmul %49, %51, %cst_44 {dimension_numbers = #tpu.dot_dimension_numbers<[1], [0], [0], [1], [0, 0, 1, 1], [], []>} : vector<16x16xbf16>, vector<16x32xbf16>, vector<16x32xf32> -> vector<16x32xf32>
    %53 = arith.addf %45, %52 : vector<16x32xf32>
    %c5 = arith.constant 5 : index
    %c0_45 = arith.constant 0 : index
    %c0_46 = arith.constant 0 : index
    %54 = vector.load %arg4[%c5, %c0_45, %c0_46] : memref<9x16x64xbf16, #tpu.memory_space<vmem>>, vector<1x16x64xbf16>
    %55 = vector.shape_cast %54 : vector<1x16x64xbf16> to vector<16x64xbf16>
    %cst_47 = arith.constant dense<0.000000e+00> : vector<16x16xf32>
    %56 = tpu.matmul %55, %12, %cst_47 {dimension_numbers = #tpu.dot_dimension_numbers<[1], [0], [0], [1], [0, 0, 1, 1], [], []>} : vector<16x64xbf16>, vector<64x16xbf16>, vector<16x16xf32> -> vector<16x16xf32>
    %57 = arith.truncf %56 : vector<16x16xf32> to vector<16x16xbf16>
    %c5_48 = arith.constant 5 : index
    %c0_49 = arith.constant 0 : index
    %c0_50 = arith.constant 0 : index
    %58 = vector.load %arg5[%c5_48, %c0_49, %c0_50] : memref<9x16x32xbf16, #tpu.memory_space<vmem>>, vector<1x16x32xbf16>
    %59 = vector.shape_cast %58 : vector<1x16x32xbf16> to vector<16x32xbf16>
    %cst_51 = arith.constant dense<0.000000e+00> : vector<16x32xf32>
    %60 = tpu.matmul %57, %59, %cst_51 {dimension_numbers = #tpu.dot_dimension_numbers<[1], [0], [0], [1], [0, 0, 1, 1], [], []>} : vector<16x16xbf16>, vector<16x32xbf16>, vector<16x32xf32> -> vector<16x32xf32>
    %61 = arith.addf %53, %60 : vector<16x32xf32>
    %c6 = arith.constant 6 : index
    %c0_52 = arith.constant 0 : index
    %c0_53 = arith.constant 0 : index
    %62 = vector.load %arg4[%c6, %c0_52, %c0_53] : memref<9x16x64xbf16, #tpu.memory_space<vmem>>, vector<1x16x64xbf16>
    %63 = vector.shape_cast %62 : vector<1x16x64xbf16> to vector<16x64xbf16>
    %cst_54 = arith.constant dense<0.000000e+00> : vector<16x16xf32>
    %64 = tpu.matmul %63, %12, %cst_54 {dimension_numbers = #tpu.dot_dimension_numbers<[1], [0], [0], [1], [0, 0, 1, 1], [], []>} : vector<16x64xbf16>, vector<64x16xbf16>, vector<16x16xf32> -> vector<16x16xf32>
    %65 = arith.truncf %64 : vector<16x16xf32> to vector<16x16xbf16>
    %c6_55 = arith.constant 6 : index
    %c0_56 = arith.constant 0 : index
    %c0_57 = arith.constant 0 : index
    %66 = vector.load %arg5[%c6_55, %c0_56, %c0_57] : memref<9x16x32xbf16, #tpu.memory_space<vmem>>, vector<1x16x32xbf16>
    %67 = vector.shape_cast %66 : vector<1x16x32xbf16> to vector<16x32xbf16>
    %cst_58 = arith.constant dense<0.000000e+00> : vector<16x32xf32>
    %68 = tpu.matmul %65, %67, %cst_58 {dimension_numbers = #tpu.dot_dimension_numbers<[1], [0], [0], [1], [0, 0, 1, 1], [], []>} : vector<16x16xbf16>, vector<16x32xbf16>, vector<16x32xf32> -> vector<16x32xf32>
    %69 = arith.addf %61, %68 : vector<16x32xf32>
    %c7 = arith.constant 7 : index
    %c0_59 = arith.constant 0 : index
    %c0_60 = arith.constant 0 : index
    %70 = vector.load %arg4[%c7, %c0_59, %c0_60] : memref<9x16x64xbf16, #tpu.memory_space<vmem>>, vector<1x16x64xbf16>
    %71 = vector.shape_cast %70 : vector<1x16x64xbf16> to vector<16x64xbf16>
    %cst_61 = arith.constant dense<0.000000e+00> : vector<16x16xf32>
    %72 = tpu.matmul %71, %12, %cst_61 {dimension_numbers = #tpu.dot_dimension_numbers<[1], [0], [0], [1], [0, 0, 1, 1], [], []>} : vector<16x64xbf16>, vector<64x16xbf16>, vector<16x16xf32> -> vector<16x16xf32>
    %73 = arith.truncf %72 : vector<16x16xf32> to vector<16x16xbf16>
    %c7_62 = arith.constant 7 : index
    %c0_63 = arith.constant 0 : index
    %c0_64 = arith.constant 0 : index
    %74 = vector.load %arg5[%c7_62, %c0_63, %c0_64] : memref<9x16x32xbf16, #tpu.memory_space<vmem>>, vector<1x16x32xbf16>
    %75 = vector.shape_cast %74 : vector<1x16x32xbf16> to vector<16x32xbf16>
    %cst_65 = arith.constant dense<0.000000e+00> : vector<16x32xf32>
    %76 = tpu.matmul %73, %75, %cst_65 {dimension_numbers = #tpu.dot_dimension_numbers<[1], [0], [0], [1], [0, 0, 1, 1], [], []>} : vector<16x16xbf16>, vector<16x32xbf16>, vector<16x32xf32> -> vector<16x32xf32>
    %77 = arith.addf %69, %76 : vector<16x32xf32>
    %c8 = arith.constant 8 : index
    %c0_66 = arith.constant 0 : index
    %c0_67 = arith.constant 0 : index
    %78 = vector.load %arg4[%c8, %c0_66, %c0_67] : memref<9x16x64xbf16, #tpu.memory_space<vmem>>, vector<1x16x64xbf16>
    %79 = vector.shape_cast %78 : vector<1x16x64xbf16> to vector<16x64xbf16>
    %cst_68 = arith.constant dense<0.000000e+00> : vector<16x16xf32>
    %80 = tpu.matmul %79, %12, %cst_68 {dimension_numbers = #tpu.dot_dimension_numbers<[1], [0], [0], [1], [0, 0, 1, 1], [], []>} : vector<16x64xbf16>, vector<64x16xbf16>, vector<16x16xf32> -> vector<16x16xf32>
    %81 = arith.truncf %80 : vector<16x16xf32> to vector<16x16xbf16>
    %c8_69 = arith.constant 8 : index
    %c0_70 = arith.constant 0 : index
    %c0_71 = arith.constant 0 : index
    %82 = vector.load %arg5[%c8_69, %c0_70, %c0_71] : memref<9x16x32xbf16, #tpu.memory_space<vmem>>, vector<1x16x32xbf16>
    %83 = vector.shape_cast %82 : vector<1x16x32xbf16> to vector<16x32xbf16>
    %cst_72 = arith.constant dense<0.000000e+00> : vector<16x32xf32>
    %84 = tpu.matmul %81, %83, %cst_72 {dimension_numbers = #tpu.dot_dimension_numbers<[1], [0], [0], [1], [0, 0, 1, 1], [], []>} : vector<16x16xbf16>, vector<16x32xbf16>, vector<16x32xf32> -> vector<16x32xf32>
    %85 = arith.addf %77, %84 : vector<16x32xf32>
    %c0_73 = arith.constant 0 : index
    %c0_74 = arith.constant 0 : index
    %86 = vector.load %arg6[%c0_73, %c0_74] : memref<1x32xf32, #tpu.memory_space<vmem>>, vector<1x32xf32>
    %87 = vector.broadcast %86 : vector<1x32xf32> to vector<16x32xf32>
    %88 = arith.addf %85, %87 : vector<16x32xf32>
    %cst_75 = arith.constant 0.000000e+00 : f32
    %89 = vector.broadcast %cst_75 : f32 to vector<16x32xf32>
    %90 = arith.cmpf oge, %88, %89 : vector<16x32xf32>
    %cst_76 = arith.constant 2.000000e-01 : f32
    %91 = vector.broadcast %cst_76 : f32 to vector<16x32xf32>
    %92 = arith.mulf %91, %88 : vector<16x32xf32>
    %93 = arith.select %90, %88, %92 : vector<16x32xi1>, vector<16x32xf32>
    %c0_77 = arith.constant 0 : index
    %c0_78 = arith.constant 0 : index
    %94 = vector.load %arg7[%c0_77, %c0_78] : memref<1x32xf32, #tpu.memory_space<vmem>>, vector<1x32xf32>
    %95 = vector.broadcast %94 : vector<1x32xf32> to vector<16x32xf32>
    %96 = arith.mulf %93, %95 : vector<16x32xf32>
    %c0_79 = arith.constant 0 : index
    %c0_80 = arith.constant 0 : index
    %97 = vector.load %arg8[%c0_79, %c0_80] : memref<1x32xf32, #tpu.memory_space<vmem>>, vector<1x32xf32>
    %98 = vector.broadcast %97 : vector<1x32xf32> to vector<16x32xf32>
    %99 = arith.addf %96, %98 : vector<16x32xf32>
    %100 = arith.truncf %99 : vector<16x32xf32> to vector<16x32xbf16>
    %cst_81 = arith.constant 0.000000e+00 : f32
    %101 = vector.broadcast %cst_81 : f32 to vector<4x64xf32>
    %c0_82 = arith.constant 0 : index
    %c0_83 = arith.constant 0 : index
    %c0_84 = arith.constant 0 : index
    %102 = vector.load %arg9[%c0_82, %c0_83, %c0_84] : memref<9x4x16xbf16, #tpu.memory_space<vmem>>, vector<1x4x16xbf16>
    %103 = vector.shape_cast %102 : vector<1x4x16xbf16> to vector<4x16xbf16>
    %cst_85 = arith.constant dense<0.000000e+00> : vector<4x32xf32>
    %104 = tpu.matmul %103, %100, %cst_85 {dimension_numbers = #tpu.dot_dimension_numbers<[1], [0], [0], [1], [0, 0, 1, 1], [], []>} : vector<4x16xbf16>, vector<16x32xbf16>, vector<4x32xf32> -> vector<4x32xf32>
    %105 = arith.truncf %104 : vector<4x32xf32> to vector<4x32xbf16>
    %c0_86 = arith.constant 0 : index
    %c0_87 = arith.constant 0 : index
    %c0_88 = arith.constant 0 : index
    %106 = vector.load %arg10[%c0_86, %c0_87, %c0_88] : memref<9x32x64xbf16, #tpu.memory_space<vmem>>, vector<1x32x64xbf16>
    %107 = vector.shape_cast %106 : vector<1x32x64xbf16> to vector<32x64xbf16>
    %cst_89 = arith.constant dense<0.000000e+00> : vector<4x64xf32>
    %108 = tpu.matmul %105, %107, %cst_89 {dimension_numbers = #tpu.dot_dimension_numbers<[1], [0], [0], [1], [0, 0, 1, 1], [], []>} : vector<4x32xbf16>, vector<32x64xbf16>, vector<4x64xf32> -> vector<4x64xf32>
    %109 = arith.addf %101, %108 : vector<4x64xf32>
    %c1_90 = arith.constant 1 : index
    %c0_91 = arith.constant 0 : index
    %c0_92 = arith.constant 0 : index
    %110 = vector.load %arg9[%c1_90, %c0_91, %c0_92] : memref<9x4x16xbf16, #tpu.memory_space<vmem>>, vector<1x4x16xbf16>
    %111 = vector.shape_cast %110 : vector<1x4x16xbf16> to vector<4x16xbf16>
    %cst_93 = arith.constant dense<0.000000e+00> : vector<4x32xf32>
    %112 = tpu.matmul %111, %100, %cst_93 {dimension_numbers = #tpu.dot_dimension_numbers<[1], [0], [0], [1], [0, 0, 1, 1], [], []>} : vector<4x16xbf16>, vector<16x32xbf16>, vector<4x32xf32> -> vector<4x32xf32>
    %113 = arith.truncf %112 : vector<4x32xf32> to vector<4x32xbf16>
    %c1_94 = arith.constant 1 : index
    %c0_95 = arith.constant 0 : index
    %c0_96 = arith.constant 0 : index
    %114 = vector.load %arg10[%c1_94, %c0_95, %c0_96] : memref<9x32x64xbf16, #tpu.memory_space<vmem>>, vector<1x32x64xbf16>
    %115 = vector.shape_cast %114 : vector<1x32x64xbf16> to vector<32x64xbf16>
    %cst_97 = arith.constant dense<0.000000e+00> : vector<4x64xf32>
    %116 = tpu.matmul %113, %115, %cst_97 {dimension_numbers = #tpu.dot_dimension_numbers<[1], [0], [0], [1], [0, 0, 1, 1], [], []>} : vector<4x32xbf16>, vector<32x64xbf16>, vector<4x64xf32> -> vector<4x64xf32>
    %117 = arith.addf %109, %116 : vector<4x64xf32>
    %c2_98 = arith.constant 2 : index
    %c0_99 = arith.constant 0 : index
    %c0_100 = arith.constant 0 : index
    %118 = vector.load %arg9[%c2_98, %c0_99, %c0_100] : memref<9x4x16xbf16, #tpu.memory_space<vmem>>, vector<1x4x16xbf16>
    %119 = vector.shape_cast %118 : vector<1x4x16xbf16> to vector<4x16xbf16>
    %cst_101 = arith.constant dense<0.000000e+00> : vector<4x32xf32>
    %120 = tpu.matmul %119, %100, %cst_101 {dimension_numbers = #tpu.dot_dimension_numbers<[1], [0], [0], [1], [0, 0, 1, 1], [], []>} : vector<4x16xbf16>, vector<16x32xbf16>, vector<4x32xf32> -> vector<4x32xf32>
    %121 = arith.truncf %120 : vector<4x32xf32> to vector<4x32xbf16>
    %c2_102 = arith.constant 2 : index
    %c0_103 = arith.constant 0 : index
    %c0_104 = arith.constant 0 : index
    %122 = vector.load %arg10[%c2_102, %c0_103, %c0_104] : memref<9x32x64xbf16, #tpu.memory_space<vmem>>, vector<1x32x64xbf16>
    %123 = vector.shape_cast %122 : vector<1x32x64xbf16> to vector<32x64xbf16>
    %cst_105 = arith.constant dense<0.000000e+00> : vector<4x64xf32>
    %124 = tpu.matmul %121, %123, %cst_105 {dimension_numbers = #tpu.dot_dimension_numbers<[1], [0], [0], [1], [0, 0, 1, 1], [], []>} : vector<4x32xbf16>, vector<32x64xbf16>, vector<4x64xf32> -> vector<4x64xf32>
    %125 = arith.addf %117, %124 : vector<4x64xf32>
    %c3_106 = arith.constant 3 : index
    %c0_107 = arith.constant 0 : index
    %c0_108 = arith.constant 0 : index
    %126 = vector.load %arg9[%c3_106, %c0_107, %c0_108] : memref<9x4x16xbf16, #tpu.memory_space<vmem>>, vector<1x4x16xbf16>
    %127 = vector.shape_cast %126 : vector<1x4x16xbf16> to vector<4x16xbf16>
    %cst_109 = arith.constant dense<0.000000e+00> : vector<4x32xf32>
    %128 = tpu.matmul %127, %100, %cst_109 {dimension_numbers = #tpu.dot_dimension_numbers<[1], [0], [0], [1], [0, 0, 1, 1], [], []>} : vector<4x16xbf16>, vector<16x32xbf16>, vector<4x32xf32> -> vector<4x32xf32>
    %129 = arith.truncf %128 : vector<4x32xf32> to vector<4x32xbf16>
    %c3_110 = arith.constant 3 : index
    %c0_111 = arith.constant 0 : index
    %c0_112 = arith.constant 0 : index
    %130 = vector.load %arg10[%c3_110, %c0_111, %c0_112] : memref<9x32x64xbf16, #tpu.memory_space<vmem>>, vector<1x32x64xbf16>
    %131 = vector.shape_cast %130 : vector<1x32x64xbf16> to vector<32x64xbf16>
    %cst_113 = arith.constant dense<0.000000e+00> : vector<4x64xf32>
    %132 = tpu.matmul %129, %131, %cst_113 {dimension_numbers = #tpu.dot_dimension_numbers<[1], [0], [0], [1], [0, 0, 1, 1], [], []>} : vector<4x32xbf16>, vector<32x64xbf16>, vector<4x64xf32> -> vector<4x64xf32>
    %133 = arith.addf %125, %132 : vector<4x64xf32>
    %c4_114 = arith.constant 4 : index
    %c0_115 = arith.constant 0 : index
    %c0_116 = arith.constant 0 : index
    %134 = vector.load %arg9[%c4_114, %c0_115, %c0_116] : memref<9x4x16xbf16, #tpu.memory_space<vmem>>, vector<1x4x16xbf16>
    %135 = vector.shape_cast %134 : vector<1x4x16xbf16> to vector<4x16xbf16>
    %cst_117 = arith.constant dense<0.000000e+00> : vector<4x32xf32>
    %136 = tpu.matmul %135, %100, %cst_117 {dimension_numbers = #tpu.dot_dimension_numbers<[1], [0], [0], [1], [0, 0, 1, 1], [], []>} : vector<4x16xbf16>, vector<16x32xbf16>, vector<4x32xf32> -> vector<4x32xf32>
    %137 = arith.truncf %136 : vector<4x32xf32> to vector<4x32xbf16>
    %c4_118 = arith.constant 4 : index
    %c0_119 = arith.constant 0 : index
    %c0_120 = arith.constant 0 : index
    %138 = vector.load %arg10[%c4_118, %c0_119, %c0_120] : memref<9x32x64xbf16, #tpu.memory_space<vmem>>, vector<1x32x64xbf16>
    %139 = vector.shape_cast %138 : vector<1x32x64xbf16> to vector<32x64xbf16>
    %cst_121 = arith.constant dense<0.000000e+00> : vector<4x64xf32>
    %140 = tpu.matmul %137, %139, %cst_121 {dimension_numbers = #tpu.dot_dimension_numbers<[1], [0], [0], [1], [0, 0, 1, 1], [], []>} : vector<4x32xbf16>, vector<32x64xbf16>, vector<4x64xf32> -> vector<4x64xf32>
    %141 = arith.addf %133, %140 : vector<4x64xf32>
    %c5_122 = arith.constant 5 : index
    %c0_123 = arith.constant 0 : index
    %c0_124 = arith.constant 0 : index
    %142 = vector.load %arg9[%c5_122, %c0_123, %c0_124] : memref<9x4x16xbf16, #tpu.memory_space<vmem>>, vector<1x4x16xbf16>
    %143 = vector.shape_cast %142 : vector<1x4x16xbf16> to vector<4x16xbf16>
    %cst_125 = arith.constant dense<0.000000e+00> : vector<4x32xf32>
    %144 = tpu.matmul %143, %100, %cst_125 {dimension_numbers = #tpu.dot_dimension_numbers<[1], [0], [0], [1], [0, 0, 1, 1], [], []>} : vector<4x16xbf16>, vector<16x32xbf16>, vector<4x32xf32> -> vector<4x32xf32>
    %145 = arith.truncf %144 : vector<4x32xf32> to vector<4x32xbf16>
    %c5_126 = arith.constant 5 : index
    %c0_127 = arith.constant 0 : index
    %c0_128 = arith.constant 0 : index
    %146 = vector.load %arg10[%c5_126, %c0_127, %c0_128] : memref<9x32x64xbf16, #tpu.memory_space<vmem>>, vector<1x32x64xbf16>
    %147 = vector.shape_cast %146 : vector<1x32x64xbf16> to vector<32x64xbf16>
    %cst_129 = arith.constant dense<0.000000e+00> : vector<4x64xf32>
    %148 = tpu.matmul %145, %147, %cst_129 {dimension_numbers = #tpu.dot_dimension_numbers<[1], [0], [0], [1], [0, 0, 1, 1], [], []>} : vector<4x32xbf16>, vector<32x64xbf16>, vector<4x64xf32> -> vector<4x64xf32>
    %149 = arith.addf %141, %148 : vector<4x64xf32>
    %c6_130 = arith.constant 6 : index
    %c0_131 = arith.constant 0 : index
    %c0_132 = arith.constant 0 : index
    %150 = vector.load %arg9[%c6_130, %c0_131, %c0_132] : memref<9x4x16xbf16, #tpu.memory_space<vmem>>, vector<1x4x16xbf16>
    %151 = vector.shape_cast %150 : vector<1x4x16xbf16> to vector<4x16xbf16>
    %cst_133 = arith.constant dense<0.000000e+00> : vector<4x32xf32>
    %152 = tpu.matmul %151, %100, %cst_133 {dimension_numbers = #tpu.dot_dimension_numbers<[1], [0], [0], [1], [0, 0, 1, 1], [], []>} : vector<4x16xbf16>, vector<16x32xbf16>, vector<4x32xf32> -> vector<4x32xf32>
    %153 = arith.truncf %152 : vector<4x32xf32> to vector<4x32xbf16>
    %c6_134 = arith.constant 6 : index
    %c0_135 = arith.constant 0 : index
    %c0_136 = arith.constant 0 : index
    %154 = vector.load %arg10[%c6_134, %c0_135, %c0_136] : memref<9x32x64xbf16, #tpu.memory_space<vmem>>, vector<1x32x64xbf16>
    %155 = vector.shape_cast %154 : vector<1x32x64xbf16> to vector<32x64xbf16>
    %cst_137 = arith.constant dense<0.000000e+00> : vector<4x64xf32>
    %156 = tpu.matmul %153, %155, %cst_137 {dimension_numbers = #tpu.dot_dimension_numbers<[1], [0], [0], [1], [0, 0, 1, 1], [], []>} : vector<4x32xbf16>, vector<32x64xbf16>, vector<4x64xf32> -> vector<4x64xf32>
    %157 = arith.addf %149, %156 : vector<4x64xf32>
    %c7_138 = arith.constant 7 : index
    %c0_139 = arith.constant 0 : index
    %c0_140 = arith.constant 0 : index
    %158 = vector.load %arg9[%c7_138, %c0_139, %c0_140] : memref<9x4x16xbf16, #tpu.memory_space<vmem>>, vector<1x4x16xbf16>
    %159 = vector.shape_cast %158 : vector<1x4x16xbf16> to vector<4x16xbf16>
    %cst_141 = arith.constant dense<0.000000e+00> : vector<4x32xf32>
    %160 = tpu.matmul %159, %100, %cst_141 {dimension_numbers = #tpu.dot_dimension_numbers<[1], [0], [0], [1], [0, 0, 1, 1], [], []>} : vector<4x16xbf16>, vector<16x32xbf16>, vector<4x32xf32> -> vector<4x32xf32>
    %161 = arith.truncf %160 : vector<4x32xf32> to vector<4x32xbf16>
    %c7_142 = arith.constant 7 : index
    %c0_143 = arith.constant 0 : index
    %c0_144 = arith.constant 0 : index
    %162 = vector.load %arg10[%c7_142, %c0_143, %c0_144] : memref<9x32x64xbf16, #tpu.memory_space<vmem>>, vector<1x32x64xbf16>
    %163 = vector.shape_cast %162 : vector<1x32x64xbf16> to vector<32x64xbf16>
    %cst_145 = arith.constant dense<0.000000e+00> : vector<4x64xf32>
    %164 = tpu.matmul %161, %163, %cst_145 {dimension_numbers = #tpu.dot_dimension_numbers<[1], [0], [0], [1], [0, 0, 1, 1], [], []>} : vector<4x32xbf16>, vector<32x64xbf16>, vector<4x64xf32> -> vector<4x64xf32>
    %165 = arith.addf %157, %164 : vector<4x64xf32>
    %c8_146 = arith.constant 8 : index
    %c0_147 = arith.constant 0 : index
    %c0_148 = arith.constant 0 : index
    %166 = vector.load %arg9[%c8_146, %c0_147, %c0_148] : memref<9x4x16xbf16, #tpu.memory_space<vmem>>, vector<1x4x16xbf16>
    %167 = vector.shape_cast %166 : vector<1x4x16xbf16> to vector<4x16xbf16>
    %cst_149 = arith.constant dense<0.000000e+00> : vector<4x32xf32>
    %168 = tpu.matmul %167, %100, %cst_149 {dimension_numbers = #tpu.dot_dimension_numbers<[1], [0], [0], [1], [0, 0, 1, 1], [], []>} : vector<4x16xbf16>, vector<16x32xbf16>, vector<4x32xf32> -> vector<4x32xf32>
    %169 = arith.truncf %168 : vector<4x32xf32> to vector<4x32xbf16>
    %c8_150 = arith.constant 8 : index
    %c0_151 = arith.constant 0 : index
    %c0_152 = arith.constant 0 : index
    %170 = vector.load %arg10[%c8_150, %c0_151, %c0_152] : memref<9x32x64xbf16, #tpu.memory_space<vmem>>, vector<1x32x64xbf16>
    %171 = vector.shape_cast %170 : vector<1x32x64xbf16> to vector<32x64xbf16>
    %cst_153 = arith.constant dense<0.000000e+00> : vector<4x64xf32>
    %172 = tpu.matmul %169, %171, %cst_153 {dimension_numbers = #tpu.dot_dimension_numbers<[1], [0], [0], [1], [0, 0, 1, 1], [], []>} : vector<4x32xbf16>, vector<32x64xbf16>, vector<4x64xf32> -> vector<4x64xf32>
    %173 = arith.addf %165, %172 : vector<4x64xf32>
    %c0_154 = arith.constant 0 : index
    %c0_155 = arith.constant 0 : index
    %174 = vector.load %arg11[%c0_154, %c0_155] : memref<1x64xf32, #tpu.memory_space<vmem>>, vector<1x64xf32>
    %175 = vector.broadcast %174 : vector<1x64xf32> to vector<4x64xf32>
    %176 = arith.addf %173, %175 : vector<4x64xf32>
    %cst_156 = arith.constant 0.000000e+00 : f32
    %177 = vector.broadcast %cst_156 : f32 to vector<4x64xf32>
    %178 = arith.cmpf oge, %176, %177 : vector<4x64xf32>
    %cst_157 = arith.constant 2.000000e-01 : f32
    %179 = vector.broadcast %cst_157 : f32 to vector<4x64xf32>
    %180 = arith.mulf %179, %176 : vector<4x64xf32>
    %181 = arith.select %178, %176, %180 : vector<4x64xi1>, vector<4x64xf32>
    %c0_158 = arith.constant 0 : index
    %c0_159 = arith.constant 0 : index
    %182 = vector.load %arg12[%c0_158, %c0_159] : memref<1x64xf32, #tpu.memory_space<vmem>>, vector<1x64xf32>
    %183 = vector.broadcast %182 : vector<1x64xf32> to vector<4x64xf32>
    %184 = arith.mulf %181, %183 : vector<4x64xf32>
    %c0_160 = arith.constant 0 : index
    %c0_161 = arith.constant 0 : index
    %185 = vector.load %arg13[%c0_160, %c0_161] : memref<1x64xf32, #tpu.memory_space<vmem>>, vector<1x64xf32>
    %186 = vector.broadcast %185 : vector<1x64xf32> to vector<4x64xf32>
    %187 = arith.addf %184, %186 : vector<4x64xf32>
    %188 = arith.truncf %187 : vector<4x64xf32> to vector<4x64xbf16>
    %cst_162 = arith.constant 0.000000e+00 : f32
    %189 = vector.broadcast %cst_162 : f32 to vector<1x128xf32>
    %c0_163 = arith.constant 0 : index
    %c0_164 = arith.constant 0 : index
    %c0_165 = arith.constant 0 : index
    %190 = vector.load %arg14[%c0_163, %c0_164, %c0_165] : memref<9x1x4xbf16, #tpu.memory_space<vmem>>, vector<1x1x4xbf16>
    %191 = vector.shape_cast %190 : vector<1x1x4xbf16> to vector<1x4xbf16>
    %cst_166 = arith.constant dense<0.000000e+00> : vector<1x64xf32>
    %192 = tpu.matmul %191, %188, %cst_166 {dimension_numbers = #tpu.dot_dimension_numbers<[1], [0], [0], [1], [0, 0, 1, 1], [], []>} : vector<1x4xbf16>, vector<4x64xbf16>, vector<1x64xf32> -> vector<1x64xf32>
    %193 = arith.truncf %192 : vector<1x64xf32> to vector<1x64xbf16>
    %c0_167 = arith.constant 0 : index
    %c0_168 = arith.constant 0 : index
    %c0_169 = arith.constant 0 : index
    %194 = vector.load %arg15[%c0_167, %c0_168, %c0_169] : memref<9x64x128xbf16, #tpu.memory_space<vmem>>, vector<1x64x128xbf16>
    %195 = vector.shape_cast %194 : vector<1x64x128xbf16> to vector<64x128xbf16>
    %cst_170 = arith.constant dense<0.000000e+00> : vector<1x128xf32>
    %196 = tpu.matmul %193, %195, %cst_170 {dimension_numbers = #tpu.dot_dimension_numbers<[1], [0], [0], [1], [0, 0, 1, 1], [], []>} : vector<1x64xbf16>, vector<64x128xbf16>, vector<1x128xf32> -> vector<1x128xf32>
    %197 = arith.addf %189, %196 : vector<1x128xf32>
    %c1_171 = arith.constant 1 : index
    %c0_172 = arith.constant 0 : index
    %c0_173 = arith.constant 0 : index
    %198 = vector.load %arg14[%c1_171, %c0_172, %c0_173] : memref<9x1x4xbf16, #tpu.memory_space<vmem>>, vector<1x1x4xbf16>
    %199 = vector.shape_cast %198 : vector<1x1x4xbf16> to vector<1x4xbf16>
    %cst_174 = arith.constant dense<0.000000e+00> : vector<1x64xf32>
    %200 = tpu.matmul %199, %188, %cst_174 {dimension_numbers = #tpu.dot_dimension_numbers<[1], [0], [0], [1], [0, 0, 1, 1], [], []>} : vector<1x4xbf16>, vector<4x64xbf16>, vector<1x64xf32> -> vector<1x64xf32>
    %201 = arith.truncf %200 : vector<1x64xf32> to vector<1x64xbf16>
    %c1_175 = arith.constant 1 : index
    %c0_176 = arith.constant 0 : index
    %c0_177 = arith.constant 0 : index
    %202 = vector.load %arg15[%c1_175, %c0_176, %c0_177] : memref<9x64x128xbf16, #tpu.memory_space<vmem>>, vector<1x64x128xbf16>
    %203 = vector.shape_cast %202 : vector<1x64x128xbf16> to vector<64x128xbf16>
    %cst_178 = arith.constant dense<0.000000e+00> : vector<1x128xf32>
    %204 = tpu.matmul %201, %203, %cst_178 {dimension_numbers = #tpu.dot_dimension_numbers<[1], [0], [0], [1], [0, 0, 1, 1], [], []>} : vector<1x64xbf16>, vector<64x128xbf16>, vector<1x128xf32> -> vector<1x128xf32>
    %205 = arith.addf %197, %204 : vector<1x128xf32>
    %c2_179 = arith.constant 2 : index
    %c0_180 = arith.constant 0 : index
    %c0_181 = arith.constant 0 : index
    %206 = vector.load %arg14[%c2_179, %c0_180, %c0_181] : memref<9x1x4xbf16, #tpu.memory_space<vmem>>, vector<1x1x4xbf16>
    %207 = vector.shape_cast %206 : vector<1x1x4xbf16> to vector<1x4xbf16>
    %cst_182 = arith.constant dense<0.000000e+00> : vector<1x64xf32>
    %208 = tpu.matmul %207, %188, %cst_182 {dimension_numbers = #tpu.dot_dimension_numbers<[1], [0], [0], [1], [0, 0, 1, 1], [], []>} : vector<1x4xbf16>, vector<4x64xbf16>, vector<1x64xf32> -> vector<1x64xf32>
    %209 = arith.truncf %208 : vector<1x64xf32> to vector<1x64xbf16>
    %c2_183 = arith.constant 2 : index
    %c0_184 = arith.constant 0 : index
    %c0_185 = arith.constant 0 : index
    %210 = vector.load %arg15[%c2_183, %c0_184, %c0_185] : memref<9x64x128xbf16, #tpu.memory_space<vmem>>, vector<1x64x128xbf16>
    %211 = vector.shape_cast %210 : vector<1x64x128xbf16> to vector<64x128xbf16>
    %cst_186 = arith.constant dense<0.000000e+00> : vector<1x128xf32>
    %212 = tpu.matmul %209, %211, %cst_186 {dimension_numbers = #tpu.dot_dimension_numbers<[1], [0], [0], [1], [0, 0, 1, 1], [], []>} : vector<1x64xbf16>, vector<64x128xbf16>, vector<1x128xf32> -> vector<1x128xf32>
    %213 = arith.addf %205, %212 : vector<1x128xf32>
    %c3_187 = arith.constant 3 : index
    %c0_188 = arith.constant 0 : index
    %c0_189 = arith.constant 0 : index
    %214 = vector.load %arg14[%c3_187, %c0_188, %c0_189] : memref<9x1x4xbf16, #tpu.memory_space<vmem>>, vector<1x1x4xbf16>
    %215 = vector.shape_cast %214 : vector<1x1x4xbf16> to vector<1x4xbf16>
    %cst_190 = arith.constant dense<0.000000e+00> : vector<1x64xf32>
    %216 = tpu.matmul %215, %188, %cst_190 {dimension_numbers = #tpu.dot_dimension_numbers<[1], [0], [0], [1], [0, 0, 1, 1], [], []>} : vector<1x4xbf16>, vector<4x64xbf16>, vector<1x64xf32> -> vector<1x64xf32>
    %217 = arith.truncf %216 : vector<1x64xf32> to vector<1x64xbf16>
    %c3_191 = arith.constant 3 : index
    %c0_192 = arith.constant 0 : index
    %c0_193 = arith.constant 0 : index
    %218 = vector.load %arg15[%c3_191, %c0_192, %c0_193] : memref<9x64x128xbf16, #tpu.memory_space<vmem>>, vector<1x64x128xbf16>
    %219 = vector.shape_cast %218 : vector<1x64x128xbf16> to vector<64x128xbf16>
    %cst_194 = arith.constant dense<0.000000e+00> : vector<1x128xf32>
    %220 = tpu.matmul %217, %219, %cst_194 {dimension_numbers = #tpu.dot_dimension_numbers<[1], [0], [0], [1], [0, 0, 1, 1], [], []>} : vector<1x64xbf16>, vector<64x128xbf16>, vector<1x128xf32> -> vector<1x128xf32>
    %221 = arith.addf %213, %220 : vector<1x128xf32>
    %c4_195 = arith.constant 4 : index
    %c0_196 = arith.constant 0 : index
    %c0_197 = arith.constant 0 : index
    %222 = vector.load %arg14[%c4_195, %c0_196, %c0_197] : memref<9x1x4xbf16, #tpu.memory_space<vmem>>, vector<1x1x4xbf16>
    %223 = vector.shape_cast %222 : vector<1x1x4xbf16> to vector<1x4xbf16>
    %cst_198 = arith.constant dense<0.000000e+00> : vector<1x64xf32>
    %224 = tpu.matmul %223, %188, %cst_198 {dimension_numbers = #tpu.dot_dimension_numbers<[1], [0], [0], [1], [0, 0, 1, 1], [], []>} : vector<1x4xbf16>, vector<4x64xbf16>, vector<1x64xf32> -> vector<1x64xf32>
    %225 = arith.truncf %224 : vector<1x64xf32> to vector<1x64xbf16>
    %c4_199 = arith.constant 4 : index
    %c0_200 = arith.constant 0 : index
    %c0_201 = arith.constant 0 : index
    %226 = vector.load %arg15[%c4_199, %c0_200, %c0_201] : memref<9x64x128xbf16, #tpu.memory_space<vmem>>, vector<1x64x128xbf16>
    %227 = vector.shape_cast %226 : vector<1x64x128xbf16> to vector<64x128xbf16>
    %cst_202 = arith.constant dense<0.000000e+00> : vector<1x128xf32>
    %228 = tpu.matmul %225, %227, %cst_202 {dimension_numbers = #tpu.dot_dimension_numbers<[1], [0], [0], [1], [0, 0, 1, 1], [], []>} : vector<1x64xbf16>, vector<64x128xbf16>, vector<1x128xf32> -> vector<1x128xf32>
    %229 = arith.addf %221, %228 : vector<1x128xf32>
    %c5_203 = arith.constant 5 : index
    %c0_204 = arith.constant 0 : index
    %c0_205 = arith.constant 0 : index
    %230 = vector.load %arg14[%c5_203, %c0_204, %c0_205] : memref<9x1x4xbf16, #tpu.memory_space<vmem>>, vector<1x1x4xbf16>
    %231 = vector.shape_cast %230 : vector<1x1x4xbf16> to vector<1x4xbf16>
    %cst_206 = arith.constant dense<0.000000e+00> : vector<1x64xf32>
    %232 = tpu.matmul %231, %188, %cst_206 {dimension_numbers = #tpu.dot_dimension_numbers<[1], [0], [0], [1], [0, 0, 1, 1], [], []>} : vector<1x4xbf16>, vector<4x64xbf16>, vector<1x64xf32> -> vector<1x64xf32>
    %233 = arith.truncf %232 : vector<1x64xf32> to vector<1x64xbf16>
    %c5_207 = arith.constant 5 : index
    %c0_208 = arith.constant 0 : index
    %c0_209 = arith.constant 0 : index
    %234 = vector.load %arg15[%c5_207, %c0_208, %c0_209] : memref<9x64x128xbf16, #tpu.memory_space<vmem>>, vector<1x64x128xbf16>
    %235 = vector.shape_cast %234 : vector<1x64x128xbf16> to vector<64x128xbf16>
    %cst_210 = arith.constant dense<0.000000e+00> : vector<1x128xf32>
    %236 = tpu.matmul %233, %235, %cst_210 {dimension_numbers = #tpu.dot_dimension_numbers<[1], [0], [0], [1], [0, 0, 1, 1], [], []>} : vector<1x64xbf16>, vector<64x128xbf16>, vector<1x128xf32> -> vector<1x128xf32>
    %237 = arith.addf %229, %236 : vector<1x128xf32>
    %c6_211 = arith.constant 6 : index
    %c0_212 = arith.constant 0 : index
    %c0_213 = arith.constant 0 : index
    %238 = vector.load %arg14[%c6_211, %c0_212, %c0_213] : memref<9x1x4xbf16, #tpu.memory_space<vmem>>, vector<1x1x4xbf16>
    %239 = vector.shape_cast %238 : vector<1x1x4xbf16> to vector<1x4xbf16>
    %cst_214 = arith.constant dense<0.000000e+00> : vector<1x64xf32>
    %240 = tpu.matmul %239, %188, %cst_214 {dimension_numbers = #tpu.dot_dimension_numbers<[1], [0], [0], [1], [0, 0, 1, 1], [], []>} : vector<1x4xbf16>, vector<4x64xbf16>, vector<1x64xf32> -> vector<1x64xf32>
    %241 = arith.truncf %240 : vector<1x64xf32> to vector<1x64xbf16>
    %c6_215 = arith.constant 6 : index
    %c0_216 = arith.constant 0 : index
    %c0_217 = arith.constant 0 : index
    %242 = vector.load %arg15[%c6_215, %c0_216, %c0_217] : memref<9x64x128xbf16, #tpu.memory_space<vmem>>, vector<1x64x128xbf16>
    %243 = vector.shape_cast %242 : vector<1x64x128xbf16> to vector<64x128xbf16>
    %cst_218 = arith.constant dense<0.000000e+00> : vector<1x128xf32>
    %244 = tpu.matmul %241, %243, %cst_218 {dimension_numbers = #tpu.dot_dimension_numbers<[1], [0], [0], [1], [0, 0, 1, 1], [], []>} : vector<1x64xbf16>, vector<64x128xbf16>, vector<1x128xf32> -> vector<1x128xf32>
    %245 = arith.addf %237, %244 : vector<1x128xf32>
    %c7_219 = arith.constant 7 : index
    %c0_220 = arith.constant 0 : index
    %c0_221 = arith.constant 0 : index
    %246 = vector.load %arg14[%c7_219, %c0_220, %c0_221] : memref<9x1x4xbf16, #tpu.memory_space<vmem>>, vector<1x1x4xbf16>
    %247 = vector.shape_cast %246 : vector<1x1x4xbf16> to vector<1x4xbf16>
    %cst_222 = arith.constant dense<0.000000e+00> : vector<1x64xf32>
    %248 = tpu.matmul %247, %188, %cst_222 {dimension_numbers = #tpu.dot_dimension_numbers<[1], [0], [0], [1], [0, 0, 1, 1], [], []>} : vector<1x4xbf16>, vector<4x64xbf16>, vector<1x64xf32> -> vector<1x64xf32>
    %249 = arith.truncf %248 : vector<1x64xf32> to vector<1x64xbf16>
    %c7_223 = arith.constant 7 : index
    %c0_224 = arith.constant 0 : index
    %c0_225 = arith.constant 0 : index
    %250 = vector.load %arg15[%c7_223, %c0_224, %c0_225] : memref<9x64x128xbf16, #tpu.memory_space<vmem>>, vector<1x64x128xbf16>
    %251 = vector.shape_cast %250 : vector<1x64x128xbf16> to vector<64x128xbf16>
    %cst_226 = arith.constant dense<0.000000e+00> : vector<1x128xf32>
    %252 = tpu.matmul %249, %251, %cst_226 {dimension_numbers = #tpu.dot_dimension_numbers<[1], [0], [0], [1], [0, 0, 1, 1], [], []>} : vector<1x64xbf16>, vector<64x128xbf16>, vector<1x128xf32> -> vector<1x128xf32>
    %253 = arith.addf %245, %252 : vector<1x128xf32>
    %c8_227 = arith.constant 8 : index
    %c0_228 = arith.constant 0 : index
    %c0_229 = arith.constant 0 : index
    %254 = vector.load %arg14[%c8_227, %c0_228, %c0_229] : memref<9x1x4xbf16, #tpu.memory_space<vmem>>, vector<1x1x4xbf16>
    %255 = vector.shape_cast %254 : vector<1x1x4xbf16> to vector<1x4xbf16>
    %cst_230 = arith.constant dense<0.000000e+00> : vector<1x64xf32>
    %256 = tpu.matmul %255, %188, %cst_230 {dimension_numbers = #tpu.dot_dimension_numbers<[1], [0], [0], [1], [0, 0, 1, 1], [], []>} : vector<1x4xbf16>, vector<4x64xbf16>, vector<1x64xf32> -> vector<1x64xf32>
    %257 = arith.truncf %256 : vector<1x64xf32> to vector<1x64xbf16>
    %c8_231 = arith.constant 8 : index
    %c0_232 = arith.constant 0 : index
    %c0_233 = arith.constant 0 : index
    %258 = vector.load %arg15[%c8_231, %c0_232, %c0_233] : memref<9x64x128xbf16, #tpu.memory_space<vmem>>, vector<1x64x128xbf16>
    %259 = vector.shape_cast %258 : vector<1x64x128xbf16> to vector<64x128xbf16>
    %cst_234 = arith.constant dense<0.000000e+00> : vector<1x128xf32>
    %260 = tpu.matmul %257, %259, %cst_234 {dimension_numbers = #tpu.dot_dimension_numbers<[1], [0], [0], [1], [0, 0, 1, 1], [], []>} : vector<1x64xbf16>, vector<64x128xbf16>, vector<1x128xf32> -> vector<1x128xf32>
    %261 = arith.addf %253, %260 : vector<1x128xf32>
    %c0_235 = arith.constant 0 : index
    %c0_236 = arith.constant 0 : index
    %262 = vector.load %arg16[%c0_235, %c0_236] : memref<1x128xf32, #tpu.memory_space<vmem>>, vector<1x128xf32>
    %263 = arith.addf %261, %262 : vector<1x128xf32>
    %cst_237 = arith.constant 0.000000e+00 : f32
    %264 = vector.broadcast %cst_237 : f32 to vector<1x128xf32>
    %265 = arith.cmpf oge, %263, %264 : vector<1x128xf32>
    %cst_238 = arith.constant 2.000000e-01 : f32
    %266 = vector.broadcast %cst_238 : f32 to vector<1x128xf32>
    %267 = arith.mulf %266, %263 : vector<1x128xf32>
    %268 = arith.select %265, %263, %267 : vector<1x128xi1>, vector<1x128xf32>
    %c0_239 = arith.constant 0 : index
    %c0_240 = arith.constant 0 : index
    %269 = vector.load %arg17[%c0_239, %c0_240] : memref<1x128xf32, #tpu.memory_space<vmem>>, vector<1x128xf32>
    %270 = arith.mulf %268, %269 : vector<1x128xf32>
    %c0_241 = arith.constant 0 : index
    %c0_242 = arith.constant 0 : index
    %271 = vector.load %arg18[%c0_241, %c0_242] : memref<1x128xf32, #tpu.memory_space<vmem>>, vector<1x128xf32>
    %272 = arith.addf %270, %271 : vector<1x128xf32>
    %c0_243 = arith.constant 0 : index
    %c0_244 = arith.constant 0 : index
    %273 = vector.load %arg19[%c0_243, %c0_244] : memref<1x128xf32, #tpu.memory_space<vmem>>, vector<1x128xf32>
    %274 = arith.mulf %272, %273 : vector<1x128xf32>
    %cst_245 = arith.constant dense<0.000000e+00> : vector<1xf32>
    %275 = vector.multi_reduction <add>, %274, %cst_245 [1] : vector<1x128xf32> to vector<1xf32>
    %276 = vector.shape_cast %275 : vector<1xf32> to vector<1x1xf32>
    %cst_246 = arith.constant dense<0.000000e+00> : vector<1xf32>
    %277 = vector.multi_reduction <add>, %276, %cst_246 [0] : vector<1x1xf32> to vector<1xf32>
    %278 = vector.shape_cast %277 : vector<1xf32> to vector<1x1xf32>
    %c0_247 = arith.constant 0 : index
    %c0_248 = arith.constant 0 : index
    %279 = vector.load %arg20[%c0_247, %c0_248] : memref<1x1xf32, #tpu.memory_space<vmem>>, vector<1x1xf32>
    %280 = arith.addf %278, %279 : vector<1x1xf32>
    %cst_249 = arith.constant 0.000000e+00 : f32
    %281 = vector.broadcast %cst_249 : f32 to vector<1x1xf32>
    %282 = arith.subf %281, %280 : vector<1x1xf32>
    %283 = math.exp %282 : vector<1x1xf32>
    %cst_250 = arith.constant 1.000000e+00 : f32
    %284 = vector.broadcast %cst_250 : f32 to vector<1x1xf32>
    %285 = arith.addf %284, %283 : vector<1x1xf32>
    %cst_251 = arith.constant 1.000000e+00 : f32
    %286 = vector.broadcast %cst_251 : f32 to vector<1x1xf32>
    %287 = arith.divf %286, %285 : vector<1x1xf32>
    %288 = math.exp %280 : vector<1x1xf32>
    %cst_252 = arith.constant 1.000000e+00 : f32
    %289 = vector.broadcast %cst_252 : f32 to vector<1x1xf32>
    %290 = arith.addf %289, %288 : vector<1x1xf32>
    %291 = arith.divf %288, %290 : vector<1x1xf32>
    %cst_253 = arith.constant 0.000000e+00 : f32
    %292 = vector.broadcast %cst_253 : f32 to vector<1x1xf32>
    %293 = arith.cmpf oge, %280, %292 : vector<1x1xf32>
    %294 = arith.select %293, %287, %291 : vector<1x1xi1>, vector<1x1xf32>
    %c0_254 = arith.constant 0 : index
    %c0_255 = arith.constant 0 : index
    %c0_256 = arith.constant 0 : index
    %295 = vector.load %arg21[%c0_254, %c0_255, %c0_256] : memref<1x1x1xf32, #tpu.memory_space<vmem>>, vector<1x1x1xf32>
    %296 = vector.shape_cast %295 : vector<1x1x1xf32> to vector<1x1xf32>
    %297 = vector.shape_cast %294 : vector<1x1xf32> to vector<1x1x1xf32>
    tpu.vector_store %arg21[%c0_254, %c0_255, %c0_256], %297 {strides = array<i32>} : memref<1x1x1xf32, #tpu.memory_space<vmem>>, vector<1x1x1xf32>,
    return
  }
  func.func @transform_0(%arg0: i32) -> (i32, i32, i32) {
    %c0_i32 = arith.constant 0 : i32
    %c0_i32_0 = arith.constant 0 : i32
    %c0_i32_1 = arith.constant 0 : i32
    return %arg0, %c0_i32, %c0_i32_0 : i32, i32, i32
  }
  func.func @transform_1(%arg0: i32) -> (i32, i32) {
    %c0_i32 = arith.constant 0 : i32
    %c0_i32_0 = arith.constant 0 : i32
    %c0_i32_1 = arith.constant 0 : i32
    return %c0_i32, %c0_i32_0 : i32, i32
  }
  func.func @transform_2(%arg0: i32) -> (i32, i32) {
    %c0_i32 = arith.constant 0 : i32
    %c0_i32_0 = arith.constant 0 : i32
    %c0_i32_1 = arith.constant 0 : i32
    return %c0_i32, %c0_i32_0 : i32, i32
  }
  func.func @transform_3(%arg0: i32) -> (i32, i32, i32) {
    %c0_i32 = arith.constant 0 : i32
    %c0_i32_0 = arith.constant 0 : i32
    %c0_i32_1 = arith.constant 0 : i32
    %c0_i32_2 = arith.constant 0 : i32
    return %c0_i32, %c0_i32_0, %c0_i32_1 : i32, i32, i32
  }
  func.func @transform_4(%arg0: i32) -> (i32, i32, i32) {
    %c0_i32 = arith.constant 0 : i32
    %c0_i32_0 = arith.constant 0 : i32
    %c0_i32_1 = arith.constant 0 : i32
    %c0_i32_2 = arith.constant 0 : i32
    return %c0_i32, %c0_i32_0, %c0_i32_1 : i32, i32, i32
  }
  func.func @transform_5(%arg0: i32) -> (i32, i32) {
    %c0_i32 = arith.constant 0 : i32
    %c0_i32_0 = arith.constant 0 : i32
    %c0_i32_1 = arith.constant 0 : i32
    return %c0_i32, %c0_i32_0 : i32, i32
  }
  func.func @transform_6(%arg0: i32) -> (i32, i32) {
    %c0_i32 = arith.constant 0 : i32
    %c0_i32_0 = arith.constant 0 : i32
    %c0_i32_1 = arith.constant 0 : i32
    return %c0_i32, %c0_i32_0 : i32, i32
  }
  func.func @transform_7(%arg0: i32) -> (i32, i32) {
    %c0_i32 = arith.constant 0 : i32
    %c0_i32_0 = arith.constant 0 : i32
    %c0_i32_1 = arith.constant 0 : i32
    return %c0_i32, %c0_i32_0 : i32, i32
  }
  func.func @transform_8(%arg0: i32) -> (i32, i32, i32) {
    %c0_i32 = arith.constant 0 : i32
    %c0_i32_0 = arith.constant 0 : i32
    %c0_i32_1 = arith.constant 0 : i32
    %c0_i32_2 = arith.constant 0 : i32
    return %c0_i32, %c0_i32_0, %c0_i32_1 : i32, i32, i32
  }
  func.func @transform_9(%arg0: i32) -> (i32, i32, i32) {
    %c0_i32 = arith.constant 0 : i32
    %c0_i32_0 = arith.constant 0 : i32
    %c0_i32_1 = arith.constant 0 : i32
    %c0_i32_2 = arith.constant 0 : i32
    return %c0_i32, %c0_i32_0, %c0_i32_1 : i32, i32, i32
  }
  func.func @transform_10(%arg0: i32) -> (i32, i32) {
    %c0_i32 = arith.constant 0 : i32
    %c0_i32_0 = arith.constant 0 : i32
    %c0_i32_1 = arith.constant 0 : i32
    return %c0_i32, %c0_i32_0 : i32, i32
  }
  func.func @transform_11(%arg0: i32) -> (i32, i32) {
    %c0_i32 = arith.constant 0 : i32
    %c0_i32_0 = arith.constant 0 : i32
    %c0_i32_1 = arith.constant 0 : i32
    return %c0_i32, %c0_i32_0 : i32, i32
  }
  func.func @transform_12(%arg0: i32) -> (i32, i32) {
    %c0_i32 = arith.constant 0 : i32
    %c0_i32_0 = arith.constant 0 : i32
    %c0_i32_1 = arith.constant 0 : i32
    return %c0_i32, %c0_i32_0 : i32, i32
  }
  func.func @transform_13(%arg0: i32) -> (i32, i32, i32) {
    %c0_i32 = arith.constant 0 : i32
    %c0_i32_0 = arith.constant 0 : i32
    %c0_i32_1 = arith.constant 0 : i32
    %c0_i32_2 = arith.constant 0 : i32
    return %c0_i32, %c0_i32_0, %c0_i32_1 : i32, i32, i32
  }
  func.func @transform_14(%arg0: i32) -> (i32, i32, i32) {
    %c0_i32 = arith.constant 0 : i32
    %c0_i32_0 = arith.constant 0 : i32
    %c0_i32_1 = arith.constant 0 : i32
    %c0_i32_2 = arith.constant 0 : i32
    return %c0_i32, %c0_i32_0, %c0_i32_1 : i32, i32, i32
  }
  func.func @transform_15(%arg0: i32) -> (i32, i32) {
    %c0_i32 = arith.constant 0 : i32
    %c0_i32_0 = arith.constant 0 : i32
    %c0_i32_1 = arith.constant 0 : i32
    return %c0_i32, %c0_i32_0 : i32, i32
  }
  func.func @transform_16(%arg0: i32) -> (i32, i32) {
    %c0_i32 = arith.constant 0 : i32
    %c0_i32_0 = arith.constant 0 : i32
    %c0_i32_1 = arith.constant 0 : i32
    return %c0_i32, %c0_i32_0 : i32, i32
  }
  func.func @transform_17(%arg0: i32) -> (i32, i32) {
    %c0_i32 = arith.constant 0 : i32
    %c0_i32_0 = arith.constant 0 : i32
    %c0_i32_1 = arith.constant 0 : i32
    return %c0_i32, %c0_i32_0 : i32, i32
  }
  func.func @transform_18(%arg0: i32) -> (i32, i32) {
    %c0_i32 = arith.constant 0 : i32
    %c0_i32_0 = arith.constant 0 : i32
    %c0_i32_1 = arith.constant 0 : i32
    return %c0_i32, %c0_i32_0 : i32, i32
  }
  func.func @transform_19(%arg0: i32) -> (i32, i32) {
    %c0_i32 = arith.constant 0 : i32
    %c0_i32_0 = arith.constant 0 : i32
    %c0_i32_1 = arith.constant 0 : i32
    return %c0_i32, %c0_i32_0 : i32, i32
  }
  func.func @transform_20(%arg0: i32) -> (i32, i32, i32) {
    %c0_i32 = arith.constant 0 : i32
    %c0_i32_0 = arith.constant 0 : i32
    %c0_i32_1 = arith.constant 0 : i32
    return %arg0, %c0_i32, %c0_i32_0 : i32, i32, i32
  }
}

</mosaic_0001>

<bundles_post_ra>
// kernel: discriminator_forward.1
= control target key start
LH: loop header
LB: loop body
LE: loop exit
PB: predicated region body
PF: predicated region fallthrough
CT: control target
= control target key end

     0   :  { %s6288_s0 = inlined_call_operand.vmem [shape: bf16[2,64,16], index: 0, kind: input, shape index: {}]   ;;  %s6289_s1 = inlined_call_operand.hbm [shape: bf16[16,16], index: 1, kind: input, shape index: {}]   ;;  %s6290_s2 = inlined_call_operand.vmem [shape: f32[1,16], index: 2, kind: input, shape index: {}]   ;;  %s6291_s3 = inlined_call_operand.vmem [shape: bf16[9,16,64], index: 3, kind: input, shape index: {}]   ;;  %s6292_s4 = inlined_call_operand.hbm [shape: bf16[9,16,32], index: 4, kind: input, shape index: {}]   ;;  %s6293_s5 = inlined_call_operand.vmem [shape: f32[1,32], index: 5, kind: input, shape index: {}]   ;;  %s6294_s6 = inlined_call_operand.vmem [shape: f32[1,32], index: 6, kind: input, shape index: {}]   ;;  %s6295_s7 = inlined_call_operand.vmem [shape: f32[1,32], index: 7, kind: input, shape index: {}]   ;;  %s6296_s8 = inlined_call_operand.vmem [shape: bf16[9,4,16], index: 8, kind: input, shape index: {}]   ;;  %s6297_s9 = inlined_call_operand.vmem [shape: bf16[9,32,64], index: 9, kind: input, shape index: {}]   ;;  %s6298_s10 = inlined_call_operand.vmem [shape: f32[1,64], index: 10, kind: input, shape index: {}]   ;;  %s6299_s11 = inlined_call_operand.vmem [shape: f32[1,64], index: 11, kind: input, shape index: {}]   ;;  %s6300_s12 = inlined_call_operand.hbm [shape: f32[1,64], index: 12, kind: input, shape index: {}]   ;;  %s6301_s13 = inlined_call_operand.vmem [shape: bf16[9,1,4], index: 13, kind: input, shape index: {}]   ;;  %s6302_s14 = inlined_call_operand.vmem [shape: bf16[9,64,128], index: 14, kind: input, shape index: {}]   ;;  %s6303_s15 = inlined_call_operand.hbm [shape: f32[1,128], index: 15, kind: input, shape index: {}]   ;;  %s6304_s16 = inlined_call_operand.hbm [shape: f32[1,128], index: 16, kind: input, shape index: {}]   ;;  %s6305_s17 = inlined_call_operand.hbm [shape: f32[1,128], index: 17, kind: input, shape index: {}]   ;;  %s6306_s18 = inlined_call_operand.hbm [shape: f32[1,128], index: 18, kind: input, shape index: {}]   ;;  %s6307_s19 = inlined_call_operand.<no memory space> [shape: f32[1,1], index: 19, kind: input, shape index: {}]   ;;  %s6308_s20 = inlined_call_operand.vmem [shape: f32[2,1,1], index: 20, kind: output, shape index: {}]  }
   0x1   :  { %6312 = sst [smem:[#allocation19_spill]] %s6288_s0  ;;  %v25_v0 = vstv %s6307_s19 }
   0x2   :  { %6313 = sst [smem:[#allocation20_spill]] %s6289_s1  ;;  %26 = vst [vmem:[#allocation2] sm:$0x1] %v25_v0 }
   0x3   :  { %6314 = sst [smem:[#allocation21_spill]] %s6290_s2 }
   0x4   :  { %6315 = sst [smem:[#allocation22_spill]] %s6291_s3 }
   0x5   :  { %6316 = sst [smem:[#allocation23_spill]] %s6292_s4 }
   0x6   :  { %6317 = sst [smem:[#allocation24_spill]] %s6308_s20 }
   0x7   :  { %27 = vsyncpa [#allocation4], 0 }
   0x8   :  { %28 = vsyncpa [#allocation6], 0 }
   0x9   :  { %29 = vsyncpa [#allocation9], 0 }
   0xa   :  { %30 = vsyncpa [#allocation12], 0  ;;  %s5539_s23 = smov 0  }
   0xb LB: > { %6318 = sst [smem:[#allocation18_spill]] %s5418_s23  ;;  %s5545_s24 = sadd.s32 4294967295, %s5418_s23   ;;  %s5418_s23 = sphi %s5539_s23, %s36_s23  }
   0xc   : > { %p4118_p0 = scmp.ge.s32.totalorder %s5418_s23, 1  ;;  %p492_p1 = scmp.lt.s32.totalorder %s5418_s23, 3 }
   0xd   : > { %p6311_p2 = scmp.eq.s32.totalorder %s5545_s24, 0  ;;  %s5420_s2 = smov [#allocation5]  }
   0xe   : > { %p5550_p3 = pnand %p4118_p0, %p492_p1  ;;  %s523_s25 = sshll.u32 %s5420_s2, 4  ;;  %s524_s25 = int_to_ptr.vmem [resolvable:$true] %s523_s25 }
   0xf   : > { %s5421_s3 = smov [#allocation8]   ;;  %s5422_s28 = smov [#allocation11]  }
  0x10   : > { %p5074_p4 = pneg %p5550_p3  ;;  %s575_s26 = sshll.u32 %s5421_s3, 4  ;;  %s5556_s26 = int_to_ptr.vmem [resolvable:$true] %s575_s26 }
  0x11   : > { %s597_s4 = sshll.u32 %s5422_s28, 4  ;;  %s5423_s29 = smov [#allocation3]   ;;  %s5564_s4 = int_to_ptr.vmem [resolvable:$true] %s597_s4 }
  0x12   : > { %p5560_p5 = pnand %p6311_p2, %p5074_p4  ;;  %s5566_s30 = sshll.u32 %s5423_s29, 4  ;;  %s505_s30 = int_to_ptr.vmem [resolvable:$true] %s5566_s30 }
  0x13   : > { %s5225_s21 = scalar_lea.vmem %s524_s25, 1152  ;;  %p5233_p10 = scmp.lt.s32.totalorder %s524_s25, %s524_s25 }
  0x14   : > { %p5570_p6 = pneg %p5560_p5  ;;  %p5226_p7 = scmp.ne.s32.totalorder %s524_s25, %s5225_s21 }
  0x15   : > { %p5234_p11 = scmp.lt.s32.totalorder %s5225_s21, %s5225_s21 }
  0x16   : > { %p5228_p8 = pnand %p5226_p7, %p5570_p6 }
  0x17   : > { %p5235_p12 = por %p5234_p11, %p5233_p10 }
  0x18   : > { %p5229_p9 = pneg %p5228_p8 }
  0x1a   : > { %p5236_p13 = pnand %p5235_p12, %p5229_p9 }
  0x1c   : > { %5239 = shalt.err (!%p5236_p13)
}
  0x1d   : > { %s5424_s1 = smov 64   ;;  %s5425_s22 = smov 4  }
  0x1e   : > { %s6322_s28 = sld [smem:[#allocation23_spill]]  ;;  %s5251_s29 = scalar_lea.vmem %s5556_s26, 16 }
  0x1f   : > { %p5252_p0 = scmp.ne.s32.totalorder %s5556_s26, %s5251_s29  ;;  %s5258_s21 = scalar_lea.vmem %s5556_s26, 32 }
  0x20   : > { %p5259_p7 = scmp.lt.s32.totalorder %s5556_s26, %s5556_s26  ;;  %p5260_p8 = scmp.lt.s32.totalorder %s5258_s21, %s5251_s29 }
  0x21   : > { %p5254_p1 = pnand %p5252_p0, %p5570_p6 }
  0x22   : > { %p5261_p9 = por %p5260_p8, %p5259_p7 }
  0x23   : > { %p5255_p4 = pneg %p5254_p1 }
  0x24   : > { %5080 = dma.hbm_to_vmem [thread:$0]  (!%p5560_p5), %s6322_s28, 1152, %s524_s25, [#allocation6], %s5424_s1, %s5424_s1, %s5425_s22  }
  0x25   : > { %p5262_p10 = pnand %p5261_p9, %p5255_p4 }
  0x27   : > { %5265 = shalt.err (!%p5262_p10)
}
  0x28   : > { %5086 = dma.hbm_to_vmem [thread:$0]  (!%p5560_p5), %s6303_s15, 16, %s5556_s26, [#allocation9]  }
  0x29   : > { %s5277_s25 = scalar_lea.vmem %s5564_s4, 16  ;;  %s5284_s2 = scalar_lea.vmem %s5564_s4, 32 }
  0x2a   : > { %p5278_p11 = scmp.ne.s32.totalorder %s5564_s4, %s5277_s25  ;;  %p5285_p0 = scmp.lt.s32.totalorder %s5564_s4, %s5564_s4 }
  0x2b   : > { %p5286_p1 = scmp.lt.s32.totalorder %s5284_s2, %s5277_s25 }
  0x2c   : > { %p5280_p12 = pnand %p5278_p11, %p5570_p6 }
  0x2d   : > { %p5287_p4 = por %p5286_p1, %p5285_p0 }
  0x2e   : > { %p5281_p13 = pneg %p5280_p12 }
  0x30   : > { %p5288_p7 = pnand %p5287_p4, %p5281_p13 }
  0x32   : > { %5291 = shalt.err (!%p5288_p7)
}
  0x33   : > { %5092 = dma.hbm_to_vmem [thread:$0]  (!%p5560_p5), %s6305_s17, 16, %s5564_s4, [#allocation12]  }
  0x34   : > { %s5303_s26 = scalar_lea.vmem %s505_s30, 128  ;;  %p5311_p11 = scmp.lt.s32.totalorder %s505_s30, %s505_s30 }
  0x35   : > { %p5304_p8 = scmp.ne.s32.totalorder %s505_s30, %s5303_s26  ;;  %p5312_p12 = scmp.lt.s32.totalorder %s5303_s26, %s5303_s26 }
  0x37   : > { %p5306_p9 = pnand %p5304_p8, %p5570_p6  ;;  %p5313_p0 = por %p5312_p12, %p5311_p11 }
  0x39   : > { %p5307_p10 = pneg %p5306_p9 }
  0x3b   : > { %p5314_p13 = pnand %p5313_p0, %p5307_p10 }
  0x3d   : > { %5317 = shalt.err (!%p5314_p13)
}
  0x3e   : > { %s6323_s29 = sld [smem:[#allocation20_spill]]  ;;  %s5426_s4 = smov [#allocation7]  }
  0x3f   : > { %s558_s21 = sshll.u32 %s5426_s4, 4  ;;  %s5427_s25 = smov [#allocation10]   ;;  %s559_s21 = int_to_ptr.vmem [resolvable:$true] %s558_s21 }
  0x40   : > { %s586_s2 = sshll.u32 %s5427_s25, 4  ;;  %s5329_s20 = scalar_lea.vmem %s559_s21, 16  ;;  %s587_s2 = int_to_ptr.vmem [resolvable:$true] %s586_s2 }
  0x41   : > { %p5330_p1 = scmp.ne.s32.totalorder %s559_s21, %s5329_s20  ;;  %s5336_s23 = scalar_lea.vmem %s559_s21, 32 }
  0x42   : > { %p5337_p8 = scmp.lt.s32.totalorder %s559_s21, %s559_s21  ;;  %p5338_p9 = scmp.lt.s32.totalorder %s5336_s23, %s5329_s20 }
  0x43   : > { %p5332_p4 = pnand %p5330_p1, %p5570_p6 }
  0x44   : > { %5077 = dma.hbm_to_vmem [thread:$0]  (!%p5560_p5), %s6323_s29, 128, %s505_s30, [#allocation4], %s5424_s1, %s5424_s1, %s5425_s22  }
  0x45   : > { %p5333_p7 = pneg %p5332_p4  ;;  %p5339_p10 = por %p5338_p9, %p5337_p8 }
  0x47   : > { %p5340_p11 = pnand %p5339_p10, %p5333_p7 }
  0x49   : > { %5343 = shalt.err (!%p5340_p11)
}
  0x4a   : > { %5083 = dma.hbm_to_vmem [thread:$0]  (!%p5560_p5), %s6300_s12, 16, %s559_s21, [#allocation6]  }
  0x4b   : > { %s5355_s1 = scalar_lea.vmem %s587_s2, 16  ;;  %s5362_s22 = scalar_lea.vmem %s587_s2, 32 }
  0x4c   : > { %p5356_p12 = scmp.ne.s32.totalorder %s587_s2, %s5355_s1  ;;  %p5363_p1 = scmp.lt.s32.totalorder %s587_s2, %s587_s2 }
  0x4d   : > { %p5364_p4 = scmp.lt.s32.totalorder %s5362_s22, %s5355_s1 }
  0x4e   : > { %p5358_p0 = pnand %p5356_p12, %p5570_p6 }
  0x4f   : > { %p5365_p2 = por %p5364_p4, %p5363_p1 }
  0x50   : > { %p5359_p13 = pneg %p5358_p0 }
  0x52   : > { %p5366_p8 = pnand %p5365_p2, %p5359_p13 }
  0x54   : > { %5369 = shalt.err (!%p5366_p8)
}
  0x55   : > { %5089 = dma.hbm_to_vmem [thread:$0]  (!%p5560_p5), %s6304_s16, 16, %s587_s2, [#allocation9]  }
  0x56   : > { %s5428_s29 = smov [#allocation13]  }
  0x57   : > { %s608_s4 = sshll.u32 %s5428_s29, 4  ;;  %s609_s4 = int_to_ptr.vmem [resolvable:$true] %s608_s4 }
  0x58   : > { %s5381_s21 = scalar_lea.vmem %s609_s4, 16  ;;  %s5388_s25 = scalar_lea.vmem %s609_s4, 32 }
  0x59   : > { %p5382_p7 = scmp.ne.s32.totalorder %s609_s4, %s5381_s21  ;;  %p5389_p11 = scmp.lt.s32.totalorder %s609_s4, %s609_s4 }
  0x5a   : > { %p5390_p12 = scmp.lt.s32.totalorder %s5388_s25, %s5381_s21 }
  0x5b   : > { %p5384_p9 = pnand %p5382_p7, %p5570_p6 }
  0x5c   : > { %p5391_p2 = por %p5390_p12, %p5389_p11 }
  0x5d   : > { %p5385_p10 = pneg %p5384_p9 }
  0x5f   : > { %p5392_p0 = pnand %p5391_p2, %p5385_p10 }
  0x61   : > { %5395 = shalt.err (!%p5392_p0)
}
  0x62   : > { %5095 = dma.hbm_to_vmem [thread:$0]  (!%p5560_p5), %s6306_s18, 16, %s609_s4, [#allocation12]  }
  0x63   : > { %632 = sbr.rel (%p5550_p3) target bundleno = 4115 (0x1013), region = 100  ;;  %p6324_p13 = scmp.eq.s32.totalorder (!%p5550_p3), %s5545_s24, 0 }
  0x68   : > { %5401 = dma.done.wait (%p6324_p13), [#allocation4], 128   ;;  %p6325_p6 = pmov %p6324_p13 }
  0x6a   : > { %5403 = vsyncadd (%p6325_p6), [#allocation4], 4294967168  ;;  %p6326_p1 = pmov %p6325_p6 }
  0x6c   : > { %5405 = dma.done.wait (%p6326_p1), [#allocation6], 1168   ;;  %p6327_p4 = pmov %p6326_p1 }
  0x6d   : > { %p6328_p8 = pmov %p6326_p1 }
  0x6e   : > { %5407 = vsyncadd (%p6327_p4), [#allocation6], 4294966128 }
  0x6f   : > { %5409 = dma.done.wait (%p6328_p8), [#allocation9], 32   ;;  %p6329_p5 = pmov %p6326_p1 }
  0x70   : > { %p6330_p3 = pmov %p6326_p1 }
  0x71   : > { %5411 = vsyncadd (%p6329_p5), [#allocation9], 4294967264 }
  0x72   : > { %5413 = dma.done.wait (%p6330_p3), [#allocation12], 32   ;;  %p6331_p7 = pmov %p6326_p1 }
  0x73   : > { %p712_p9 = scmp.lt.s32.totalorder %s5545_s24, 1  ;;  %s6332_s2 = sld [smem:[#allocation19_spill]]  ;;  %v5129_v1 = vld [vmem:[#allocation3] sm:$0xff]   ;;  %vm764_vm0 = vcmask 130048   ;;  %v5429_v6 = vmov 0.0   ;;  %vm5430_vm1 = vmmov 0  }
  0x74   : > { %5415 = vsyncadd (%p6331_p7), [#allocation12], 4294967264  ;;  %4586 = vmatprep.subr.bf16.mxu0 %v5129_v1  ;;  %4596 = vmatprep.subr.bf16.mxu1 %v5429_v6  ;;  %s6333_s22 = sld [smem:[#allocation21_spill]]  ;;  %vm877_vm10 = vcmask 523264   ;;  %v5137_v47 = vld [vmem:[#allocation5 + $0x8] sm:$0xff]   ;;  %v5138_v54 = vld [vmem:[#allocation5] sm:$0xff]  }
  0x75   : > { %s6338_s24 = smov (!%p712_p9, %s5545_s24), 1  ;;  %4587 = vmatpush3.bf16.msra.mxu0 %v5129_v1  ;;  %4604 = vmatprep.mubr.msk.bf16.mxu1 %vm5430_vm1, %v5429_v6  ;;  %s6334_s29 = sld [smem:[#allocation22_spill]]  ;;  %v5139_v58 = vld [vmem:[#allocation5 + $0x10] sm:$0xff]   ;;  %vm1983_vm13 = vcmask 261120   ;;  %vm2864_vm15 = vcmask 1041408  }
  0x76   : > { %s4409_s19 = sshll.u32 %s6338_s24, 5  ;;  %4608 = vmatprep.subr.bf16.mxu0 %v5429_v6  ;;  %s6335_s0 = sld [smem:[#allocation24_spill]] }
  0x79   : > { %s716_s26 = scalar_lea.vmem %s6332_s2, %s4409_s19 }
  0x7a   : > { %v5130_v2 = vld [vmem:[%s716_s26] sm:$0xff]   ;;  %v5131_v3 = vld [vmem:[%s716_s26 + $0x8] sm:$0xff]   ;;  %v5132_v4 = vld [vmem:[%s716_s26 + $0x10] sm:$0xff]  }
  0x7b   : > { %4588 = vmatprep.mubr.msk.bf16.mxu0 %vm764_vm0, %v5130_v2  ;;  %v5133_v5 = vld [vmem:[%s716_s26 + $0x18] sm:$0xff]   ;;  %v4137_v11 = vld [vmem:[%s6333_s22] ss:$0 sm:$0xff]  ;;  %v5135_v45 = vld [vmem:[%s6334_s29 + $0x8] sm:$0xff]  }
  0x7c   : > { %4589 = vmatmul.mubr.msk.bf16.vlgmr.msra.gmra.mxu0 %vm764_vm0, %v5131_v3  ;;  %v5134_v44 = vld [vmem:[%s6334_s29] sm:$0xff]   ;;  %v5136_v46 = vld [vmem:[%s6334_s29 + $0x10] sm:$0xff]   ;;  %v5140_v1 = vld [vmem:[%s6334_s29 + $0x18] sm:$0xff]   ;;  %s719_s2 = scalar_lea.vmem %s6335_s0, %s6338_s24 }
  0x7d   : > { %4592 = vmatprep.mubr.msk.bf16.mxu0 %vm764_vm0, %v5132_v4  ;;  %v5141_v2 = vld [vmem:[#allocation5 + $0x18] sm:$0xff]  }
  0x84   : > { %4593 = vmatmul.mubr.msk.bf16.gmra.mxu0 %vm764_vm0, %v5133_v5 }
  0x85   : > { %4616 = vmatprep.mubr.msk.bf16.mxu0 %vm5430_vm1, %v5429_v6 }
 0x13c   : > { %v4590_v7 = vpop.f32.mrf.mxu0 }
 0x13d   : > { %v820_v23 = vadd.f32 %v4590_v7, %v4137_v11 }
 0x13e   : > { %v811_v8 = vpop.f32.mrf.mxu0 }
 0x13f   : > { %v852_v32 = vmul.f32 0.2, %v820_v23  ;;  %v812_v33 = vadd.f32 %v4137_v11, %v811_v8  ;;  %vm844_vm7 = vcmp.ge.f32.partialorder %v820_v23, 0.0 }
 0x140   : > { %v4591_v9 = vpop.f32.mrf.mxu0 }
 0x141   : > { %v823_v20 = vadd.f32 %v4591_v9, %v4137_v11  ;;  %v860_v38 = vsel %vm844_vm7, %v820_v23, %v852_v32  ;;  %v850_v39 = vmul.f32 0.2, %v812_v33  ;;  %vm842_vm9 = vcmp.ge.f32.partialorder %v812_v33, 0.0 }
 0x142   : > { %v814_v10 = vpop.f32.mrf.mxu0 }
 0x143   : > { %v853_v29 = vmul.f32 0.2, %v823_v20  ;;  %v815_v30 = vadd.f32 %v4137_v11, %v814_v10  ;;  %vm845_vm6 = vcmp.ge.f32.partialorder %v823_v20, 0.0  ;;  %v858_v42 = vsel %vm842_vm9, %v812_v33, %v850_v39 }
 0x144   : > { %v4594_v12 = vpop.f32.mrf.mxu0 }
 0x145   : > { %v836_v13 = vadd.f32 %v4594_v12, %v4137_v11  ;;  %v861_v36 = vsel %vm845_vm6, %v823_v20, %v853_v29  ;;  %v851_v37 = vmul.f32 0.2, %v815_v30  ;;  %vm843_vm8 = vcmp.ge.f32.partialorder %v815_v30, 0.0 }
 0x146   : > { %v827_v14 = vpop.f32.mrf.mxu0  ;;  %v5693_v40 = vpack.c.bf16 %v861_v36, %v860_v38 }
 0x147   : > { %v856_v15 = vmul.f32 0.2, %v836_v13  ;;  %vm848_vm2 = vcmp.ge.f32.partialorder %v836_v13, 0.0  ;;  %v828_v17 = vadd.f32 %v4137_v11, %v827_v14  ;;  %v859_v41 = vsel %vm843_vm8, %v815_v30, %v851_v37 }
 0x148   : > { %v4595_v16 = vpop.f32.mrf.mxu0  ;;  %v5699_v43 = vpack.c.bf16 %v859_v41, %v858_v42  ;;  %v5144_v41 = vld [vmem:[%s6334_s29 + $0x28] sm:$0xff]   ;;  %v5145_v42 = vld [vmem:[#allocation5 + $0x28] sm:$0xff]  }
 0x149   : > { %v839_v18 = vadd.f32 %v4595_v16, %v4137_v11  ;;  %v864_v24 = vsel %vm848_vm2, %v836_v13, %v856_v15  ;;  %v854_v25 = vmul.f32 0.2, %v828_v17  ;;  %vm846_vm5 = vcmp.ge.f32.partialorder %v828_v17, 0.0 }
 0x14a   : > { %v830_v19 = vpop.f32.mrf.mxu0  ;;  %vm3978_vm2 = vcmask 1040384  }
 0x14b   : > { %vm849_vm3 = vcmp.ge.f32.partialorder %v839_v18, 0.0  ;;  %v857_v21 = vmul.f32 0.2, %v839_v18  ;;  %v831_v22 = vadd.f32 %v4137_v11, %v830_v19  ;;  %v862_v34 = vsel %vm846_vm5, %v828_v17, %v854_v25  ;;  %v5142_v25 = vld [vmem:[%s6334_s29 + $0x20] sm:$0xff]  }
 0x14d   : > { %v865_v26 = vsel %vm849_vm3, %v839_v18, %v857_v21  ;;  %vm847_vm4 = vcmp.ge.f32.partialorder %v831_v22, 0.0  ;;  %v855_v27 = vmul.f32 0.2, %v831_v22  ;;  %vm3998_vm3 = vcmask 0  }
 0x14e   : > { %v5681_v28 = vpack.c.bf16 %v865_v26, %v864_v24  ;;  %v5143_v26 = vld [vmem:[#allocation5 + $0x20] sm:$0xff]  }
 0x14f   : > { %v863_v31 = vsel %vm847_vm4, %v831_v22, %v855_v27 }
 0x150   : > { %4597 = vmatpush3.bf16.msra.mxu1 %v5681_v28  ;;  %4609 = vmatpush3.bf16.msra.mxu0 %v5681_v28  ;;  %v5687_v35 = vpack.c.bf16 %v863_v31, %v862_v34 }
 0x151   : > { %4598 = vmatprep.subr.bf16.mxu1 %v5429_v6  ;;  %4610 = vmatprep.subr.bf16.mxu0 %v5429_v6 }
 0x154   : > { %4599 = vmatpush3.bf16.msra.mxu1 %v5687_v35  ;;  %4611 = vmatpush3.bf16.msra.mxu0 %v5687_v35 }
 0x155   : > { %4600 = vmatprep.subr.bf16.mxu1 %v5429_v6  ;;  %4612 = vmatprep.subr.bf16.mxu0 %v5429_v6 }
 0x158   : > { %4601 = vmatpush3.bf16.msra.mxu1 %v5693_v40  ;;  %4613 = vmatpush3.bf16.msra.mxu0 %v5693_v40 }
 0x159   : > { %4602 = vmatprep.subr.bf16.mxu1 %v5429_v6  ;;  %4614 = vmatprep.subr.bf16.mxu0 %v5429_v6 }
 0x15c   : > { %4603 = vmatpush3.bf16.msra.mxu1 %v5699_v43  ;;  %4615 = vmatpush3.bf16.msra.mxu0 %v5699_v43 }
 0x15d   : > { %4632 = vmatprep.subr.bf16.mxu1 %v5429_v6  ;;  %4620 = vmatprep.subr.bf16.mxu0 %v5429_v6 }
 0x15f   : > { %4605 = vmatmul.mubr.msk.bf16.vlgmr.msra.gmra.mxu1 %vm877_vm10, %v5134_v44  ;;  %4617 = vmatmul.mubr.msk.bf16.vlgmr.msra.gmra.mxu0 %vm877_vm10, %v5135_v45 }
 0x160   : > { %4633 = vmatpush3.bf16.msra.mxu1 %v5681_v28  ;;  %4640 = vmatprep.mubr.msk.bf16.mxu1 %vm5430_vm1, %v5429_v6 }
 0x161   : > { %4634 = vmatprep.subr.bf16.mxu1 %v5429_v6  ;;  %4622 = vmatprep.mubr.msk.bf16.mxu0 %vm5430_vm1, %v5429_v6 }
 0x162   : > { %4621 = vmatpush3.bf16.msra.mxu0 %v5137_v47 }
 0x163   : > { %4626 = vmatprep.subr.bf16.mxu0 %v5429_v6 }
 0x164   : > { %4635 = vmatpush3.bf16.msra.mxu1 %v5687_v35 }
 0x165   : > { %4636 = vmatprep.subr.bf16.mxu1 %v5429_v6 }
 0x168   : > { %4637 = vmatpush3.bf16.msra.mxu1 %v5693_v40 }
 0x169   : > { %4638 = vmatprep.subr.bf16.mxu1 %v5429_v6 }
 0x16c   : > { %4639 = vmatpush3.bf16.msra.mxu1 %v5699_v43 }
 0x16d   : > { %4662 = vmatprep.subr.bf16.mxu1 %v5429_v6 }
 0x16f   : > { %4641 = vmatmul.mubr.msk.bf16.vlgmr.msra.gmra.mxu1 %vm877_vm10, %v5136_v46 }
 0x170   : > { %4664 = vmatprep.mubr.msk.bf16.mxu1 %vm5430_vm1, %v5429_v6  ;;  %4663 = vmatpush3.bf16.msra.mxu1 %v5141_v2 }
 0x171   : > { %4668 = vmatprep.subr.bf16.mxu1 %v5429_v6 }
 0x21f   : > { %v915_v48 = vpop.f32.mrf.mxu1  ;;  %v970_v49 = vpop.f32.mrf.mxu0 }
 0x221   : > { %v4606_v50 = vpop.f32.mrf.mxu1  ;;  %v4618_v51 = vpop.f32.mrf.mxu0 }
 0x223   : > { %v918_v52 = vpop.f32.mrf.mxu1  ;;  %v973_v53 = vpop.f32.mrf.mxu0 }
 0x224   : > { %v977_v55 = vpack.c.bf16 %v973_v53, %v970_v49  ;;  %v922_v59 = vpack.c.bf16 %v918_v52, %v915_v48 }
 0x225   : > { %v4607_v56 = vpop.f32.mrf.mxu1  ;;  %v4619_v57 = vpop.f32.mrf.mxu0 }
 0x226   : > { %4623 = vmatmul.mubr.msk.bf16.vlgmr.msra.gmra.mxu0 %vm764_vm0, %v977_v55  ;;  %v5146_v55 = vld [vmem:[%s6334_s29 + $0x30] sm:$0xff]   ;;  %v5147_v56 = vld [vmem:[#allocation5 + $0x30] sm:$0xff]  }
 0x227   : > { %4627 = vmatpush3.bf16.msra.mxu0 %v5138_v54  ;;  %4628 = vmatprep.mubr.msk.bf16.mxu0 %vm5430_vm1, %v5429_v6 }
 0x228   : > { %4644 = vmatprep.subr.bf16.mxu0 %v5429_v6 }
 0x22e   : > { %4629 = vmatmul.mubr.msk.bf16.vlgmr.msra.gmra.mxu0 %vm764_vm0, %v922_v59 }
 0x22f   : > { %v1126_v60 = vpop.f32.mrf.mxu1  ;;  %4645 = vmatpush3.bf16.msra.mxu0 %v5139_v58  ;;  %4646 = vmatprep.mubr.msk.bf16.mxu0 %vm5430_vm1, %v5429_v6 }
 0x230   : > { %4650 = vmatprep.subr.bf16.mxu0 %v5429_v6 }
 0x231   : > { %v4642_v61 = vpop.f32.mrf.mxu1 }
 0x233   : > { %v1129_v62 = vpop.f32.mrf.mxu1 }
 0x234   : > { %v1133_v63 = vpack.c.bf16 %v1129_v62, %v1126_v60 }
 0x235   : > { %v4643_v0 = vpop.f32.mrf.mxu1 }
 0x236   : > { %4647 = vmatmul.mubr.msk.bf16.vlgmr.msra.gmra.mxu0 %vm764_vm0, %v1133_v63 }
 0x237   : > { %4651 = vmatpush3.bf16.msra.mxu0 %v5681_v28  ;;  %4658 = vmatprep.mubr.msk.bf16.mxu0 %vm5430_vm1, %v5429_v6 }
 0x238   : > { %4652 = vmatprep.subr.bf16.mxu0 %v5429_v6 }
 0x23b   : > { %4653 = vmatpush3.bf16.msra.mxu0 %v5687_v35 }
 0x23c   : > { %4654 = vmatprep.subr.bf16.mxu0 %v5429_v6 }
 0x23f   : > { %4655 = vmatpush3.bf16.msra.mxu0 %v5693_v40 }
 0x240   : > { %4656 = vmatprep.subr.bf16.mxu0 %v5429_v6 }
 0x243   : > { %4657 = vmatpush3.bf16.msra.mxu0 %v5699_v43 }
 0x244   : > { %4680 = vmatprep.subr.bf16.mxu0 %v5429_v6 }
 0x246   : > { %4659 = vmatmul.mubr.msk.bf16.vlgmr.msra.gmra.mxu0 %vm877_vm10, %v5140_v1 }
 0x247   : > { %4682 = vmatprep.mubr.msk.bf16.mxu0 %vm5430_vm1, %v5429_v6  ;;  %4681 = vmatpush3.bf16.msra.mxu0 %v5143_v26 }
 0x248   : > { %4686 = vmatprep.subr.bf16.mxu0 %v5429_v6 }
 0x2e6   : > { %v1024_v3 = vpop.f32.mrf.mxu0 }
 0x2e8   : > { %v4624_v4 = vpop.f32.mrf.mxu0 }
 0x2e9   : > { %v5148_v4 = vld [vmem:[%s6334_s29 + $0x38] sm:$0xff]  }
 0x2ea   : > { %v1027_v5 = vpop.f32.mrf.mxu0 }
 0x2ec   : > { %v4625_v7 = vpop.f32.mrf.mxu0 }
 0x2ee   : > { %v1074_v8 = vpop.f32.mrf.mxu0 }
 0x2ef   : > { %v1075_v9 = vadd.f32 %v1074_v8, %v1024_v3 }
 0x2f0   : > { %v4630_v10 = vpop.f32.mrf.mxu0 }
 0x2f2   : > { %v1077_v11 = vpop.f32.mrf.mxu0 }
 0x2f3   : > { %v1078_v12 = vadd.f32 %v1077_v11, %v1027_v5  ;;  %v5149_v5 = vld [vmem:[#allocation5 + $0x38] sm:$0xff]  }
 0x2f4   : > { %v4631_v13 = vpop.f32.mrf.mxu0 }
 0x2f6   : > { %v1180_v14 = vpop.f32.mrf.mxu0 }
 0x2f7   : > { %v1187_v15 = vadd.f32 %v1180_v14, %v1075_v9 }
 0x2f8   : > { %v4648_v16 = vpop.f32.mrf.mxu0 }
 0x2fa   : > { %v1183_v17 = vpop.f32.mrf.mxu0 }
 0x2fb   : > { %v1188_v18 = vadd.f32 %v1183_v17, %v1078_v12 }
 0x2fc   : > { %v4649_v19 = vpop.f32.mrf.mxu0 }
 0x306   : > { %v1234_v20 = vpop.f32.mrf.mxu0 }
 0x308   : > { %v4660_v21 = vpop.f32.mrf.mxu0 }
 0x30a   : > { %v1237_v22 = vpop.f32.mrf.mxu0 }
 0x30b   : > { %v1241_v23 = vpack.c.bf16 %v1237_v22, %v1234_v20 }
 0x30c   : > { %v4661_v24 = vpop.f32.mrf.mxu0 }
 0x30d   : > { %4665 = vmatmul.mubr.msk.bf16.vlgmr.msra.gmra.mxu1 %vm764_vm0, %v1241_v23 }
 0x30e   : > { %4669 = vmatpush3.bf16.msra.mxu1 %v5681_v28  ;;  %4676 = vmatprep.mubr.msk.bf16.mxu1 %vm5430_vm1, %v5429_v6 }
 0x30f   : > { %4670 = vmatprep.subr.bf16.mxu1 %v5429_v6 }
 0x312   : > { %4671 = vmatpush3.bf16.msra.mxu1 %v5687_v35 }
 0x313   : > { %4672 = vmatprep.subr.bf16.mxu1 %v5429_v6 }
 0x316   : > { %4673 = vmatpush3.bf16.msra.mxu1 %v5693_v40 }
 0x317   : > { %4674 = vmatprep.subr.bf16.mxu1 %v5429_v6 }
 0x31a   : > { %4675 = vmatpush3.bf16.msra.mxu1 %v5699_v43 }
 0x31b   : > { %4698 = vmatprep.subr.bf16.mxu1 %v5429_v6 }
 0x31d   : > { %4677 = vmatmul.mubr.msk.bf16.vlgmr.msra.gmra.mxu1 %vm877_vm10, %v5142_v25 }
 0x31e   : > { %4700 = vmatprep.mubr.msk.bf16.mxu1 %vm5430_vm1, %v5429_v6  ;;  %4699 = vmatpush3.bf16.msra.mxu1 %v5145_v42 }
 0x31f   : > { %4704 = vmatprep.subr.bf16.mxu1 %v5429_v6 }
 0x3cd   : > { %v1288_v27 = vpop.f32.mrf.mxu1 }
 0x3ce   : > { %v1295_v29 = vadd.f32 %v1288_v27, %v1187_v15 }
 0x3cf   : > { %v4666_v30 = vpop.f32.mrf.mxu1 }
 0x3d1   : > { %v1291_v31 = vpop.f32.mrf.mxu1 }
 0x3d2   : > { %v1296_v32 = vadd.f32 %v1291_v31, %v1188_v18  ;;  %v5150_v18 = vld [vmem:[%s6334_s29 + $0x40] sm:$0xff]  }
 0x3d3   : > { %v4667_v33 = vpop.f32.mrf.mxu1 }
 0x3dd   : > { %v1342_v34 = vpop.f32.mrf.mxu1 }
 0x3df   : > { %v4678_v36 = vpop.f32.mrf.mxu1 }
 0x3e1   : > { %v1345_v37 = vpop.f32.mrf.mxu1 }
 0x3e2   : > { %v1349_v38 = vpack.c.bf16 %v1345_v37, %v1342_v34 }
 0x3e3   : > { %v4679_v39 = vpop.f32.mrf.mxu1 }
 0x3e4   : > { %4683 = vmatmul.mubr.msk.bf16.vlgmr.msra.gmra.mxu0 %vm764_vm0, %v1349_v38  ;;  %v4200_v39 = vld [vmem:[%s6294_s6] ss:$0 sm:$0xff] }
 0x3e5   : > { %4687 = vmatpush3.bf16.msra.mxu0 %v5681_v28  ;;  %4694 = vmatprep.mubr.msk.bf16.mxu0 %vm5430_vm1, %v5429_v6 }
 0x3e6   : > { %4688 = vmatprep.subr.bf16.mxu0 %v5429_v6 }
 0x3e9   : > { %4689 = vmatpush3.bf16.msra.mxu0 %v5687_v35 }
 0x3ea   : > { %4690 = vmatprep.subr.bf16.mxu0 %v5429_v6 }
 0x3ed   : > { %4691 = vmatpush3.bf16.msra.mxu0 %v5693_v40 }
 0x3ee   : > { %4692 = vmatprep.subr.bf16.mxu0 %v5429_v6 }
 0x3f1   : > { %4693 = vmatpush3.bf16.msra.mxu0 %v5699_v43 }
 0x3f2   : > { %4716 = vmatprep.subr.bf16.mxu0 %v5429_v6 }
 0x3f4   : > { %4695 = vmatmul.mubr.msk.bf16.vlgmr.msra.gmra.mxu0 %vm877_vm10, %v5144_v41 }
 0x3f5   : > { %4718 = vmatprep.mubr.msk.bf16.mxu0 %vm5430_vm1, %v5429_v6  ;;  %4717 = vmatpush3.bf16.msra.mxu0 %v5147_v56  ;;  %v5155_v56 = vld [vmem:[%s6297_s9] sm:$0xff]  }
 0x3f6   : > { %4722 = vmatprep.subr.bf16.mxu0 %v5429_v6 }
 0x4a4   : > { %v1396_v44 = vpop.f32.mrf.mxu0 }
 0x4a5   : > { %v1403_v45 = vadd.f32 %v1396_v44, %v1295_v29  ;;  %v4199_v29 = vld [vmem:[%s6293_s5] ss:$0 sm:$0xff] }
 0x4a6   : > { %v4684_v46 = vpop.f32.mrf.mxu0 }
 0x4a8   : > { %v1399_v47 = vpop.f32.mrf.mxu0 }
 0x4a9   : > { %v1404_v48 = vadd.f32 %v1399_v47, %v1296_v32 }
 0x4aa   : > { %v4685_v49 = vpop.f32.mrf.mxu0 }
 0x4b4   : > { %v1450_v50 = vpop.f32.mrf.mxu0 }
 0x4b6   : > { %v4696_v51 = vpop.f32.mrf.mxu0 }
 0x4b7   : > { %v1871_v51 = vld [vmem:[%s6296_s8] sm:$0x3] }
 0x4b8   : > { %v1453_v52 = vpop.f32.mrf.mxu0 }
 0x4b9   : > { %v1457_v53 = vpack.c.bf16 %v1453_v52, %v1450_v50  ;;  %v4203_v52 = vld [vmem:[%s6296_s8 + $0x2] sm:$0x3] }
 0x4ba   : > { %v4697_v54 = vpop.f32.mrf.mxu0 }
 0x4bb   : > { %4701 = vmatmul.mubr.msk.bf16.vlgmr.msra.gmra.mxu1 %vm764_vm0, %v1457_v53  ;;  %v5152_v53 = vld [vmem:[%s6297_s9 + $0x18] sm:$0xff]   ;;  %v5153_v54 = vld [vmem:[%s6297_s9 + $0x8] sm:$0xff]  }
 0x4bc   : > { %4705 = vmatpush3.bf16.msra.mxu1 %v5681_v28  ;;  %4712 = vmatprep.mubr.msk.bf16.mxu1 %vm5430_vm1, %v5429_v6 }
 0x4bd   : > { %4706 = vmatprep.subr.bf16.mxu1 %v5429_v6 }
 0x4c0   : > { %4707 = vmatpush3.bf16.msra.mxu1 %v5687_v35 }
 0x4c1   : > { %4708 = vmatprep.subr.bf16.mxu1 %v5429_v6 }
 0x4c4   : > { %4709 = vmatpush3.bf16.msra.mxu1 %v5693_v40 }
 0x4c5   : > { %4710 = vmatprep.subr.bf16.mxu1 %v5429_v6 }
 0x4c8   : > { %4711 = vmatpush3.bf16.msra.mxu1 %v5699_v43 }
 0x4c9   : > { %4734 = vmatprep.subr.bf16.mxu1 %v5429_v6 }
 0x4cb   : > { %4713 = vmatmul.mubr.msk.bf16.vlgmr.msra.gmra.mxu1 %vm877_vm10, %v5146_v55  ;;  %v5154_v55 = vld [vmem:[%s6297_s9 + $0x10] sm:$0xff]  }
 0x4cc   : > { %4736 = vmatprep.mubr.msk.bf16.mxu1 %vm5430_vm1, %v5429_v6  ;;  %4735 = vmatpush3.bf16.msra.mxu1 %v5149_v5  ;;  %v4233_v5 = vld [vmem:[%s6296_s8 + $0x8] sm:$0x3] }
 0x4cd   : > { %4740 = vmatprep.subr.bf16.mxu1 %v5429_v6 }
 0x57b   : > { %v1504_v57 = vpop.f32.mrf.mxu1 }
 0x57c   : > { %v1511_v58 = vadd.f32 %v1504_v57, %v1403_v45  ;;  %v4201_v45 = vld [vmem:[%s6295_s7] ss:$0 sm:$0xff] }
 0x57d   : > { %v4702_v59 = vpop.f32.mrf.mxu1 }
 0x57f   : > { %v1507_v60 = vpop.f32.mrf.mxu1 }
 0x580   : > { %v1512_v61 = vadd.f32 %v1507_v60, %v1404_v48 }
 0x581   : > { %v4703_v62 = vpop.f32.mrf.mxu1 }
 0x58b   : > { %v1558_v63 = vpop.f32.mrf.mxu1 }
 0x58d   : > { %v4714_v0 = vpop.f32.mrf.mxu1 }
 0x58f   : > { %v1561_v1 = vpop.f32.mrf.mxu1 }
 0x590   : > { %v1565_v2 = vpack.c.bf16 %v1561_v1, %v1558_v63 }
 0x591   : > { %v4715_v3 = vpop.f32.mrf.mxu1 }
 0x592   : > { %4719 = vmatmul.mubr.msk.bf16.vlgmr.msra.gmra.mxu0 %vm764_vm0, %v1565_v2  ;;  %v4215_v3 = vld [vmem:[%s6296_s8 + $0x4] sm:$0x3] }
 0x593   : > { %4723 = vmatpush3.bf16.msra.mxu0 %v5681_v28  ;;  %4730 = vmatprep.mubr.msk.bf16.mxu0 %vm5430_vm1, %v5429_v6 }
 0x594   : > { %4724 = vmatprep.subr.bf16.mxu0 %v5429_v6 }
 0x597   : > { %4725 = vmatpush3.bf16.msra.mxu0 %v5687_v35 }
 0x598   : > { %4726 = vmatprep.subr.bf16.mxu0 %v5429_v6 }
 0x59b   : > { %4727 = vmatpush3.bf16.msra.mxu0 %v5693_v40 }
 0x59c   : > { %4728 = vmatprep.subr.bf16.mxu0 %v5429_v6 }
 0x59f   : > { %4729 = vmatpush3.bf16.msra.mxu0 %v5699_v43 }
 0x5a0   : > { %4752 = vmatprep.subr.bf16.mxu0 %v5429_v6 }
 0x5a2   : > { %4731 = vmatmul.mubr.msk.bf16.vlgmr.msra.gmra.mxu0 %vm877_vm10, %v5148_v4  ;;  %v4224_v4 = vld [vmem:[%s6296_s8 + $0x6] sm:$0x3] }
 0x5a3   : > { %4754 = vmatprep.mubr.msk.bf16.mxu0 %vm5430_vm1, %v5429_v6 }
 0x652   : > { %v1612_v7 = vpop.f32.mrf.mxu0 }
 0x653   : > { %v1619_v8 = vadd.f32 %v1612_v7, %v1511_v58  ;;  %v4242_v7 = vld [vmem:[%s6296_s8 + $0xa] sm:$0x3] }
 0x654   : > { %v4720_v9 = vpop.f32.mrf.mxu0 }
 0x655   : > { %v4260_v9 = vld [vmem:[%s6296_s8 + $0xe] sm:$0x3] }
 0x656   : > { %v1615_v10 = vpop.f32.mrf.mxu0 }
 0x657   : > { %v1620_v11 = vadd.f32 %v1615_v10, %v1512_v61  ;;  %v4269_v10 = vld [vmem:[%s6296_s8 + $0x10] sm:$0x3] }
 0x658   : > { %v4721_v12 = vpop.f32.mrf.mxu0 }
 0x659   : > { %v5157_v12 = vld [vmem:[%s6297_s9 + $0x20] sm:$0xff]  }
 0x662   : > { %v1666_v13 = vpop.f32.mrf.mxu0 }
 0x664   : > { %v4732_v14 = vpop.f32.mrf.mxu0 }
 0x666   : > { %v1669_v15 = vpop.f32.mrf.mxu0 }
 0x667   : > { %v1673_v16 = vpack.c.bf16 %v1669_v15, %v1666_v13 }
 0x668   : > { %v4733_v17 = vpop.f32.mrf.mxu0 }
 0x669   : > { %4737 = vmatmul.mubr.msk.bf16.vlgmr.msra.gmra.mxu1 %vm764_vm0, %v1673_v16 }
 0x66a   : > { %4741 = vmatpush3.bf16.msra.mxu1 %v5681_v28  ;;  %4748 = vmatprep.mubr.msk.bf16.mxu1 %vm5430_vm1, %v5429_v6  ;;  %v5151_v28 = vld [vmem:[#allocation5 + $0x40] sm:$0xff]  }
 0x66b   : > { %4742 = vmatprep.subr.bf16.mxu1 %v5429_v6  ;;  %4753 = vmatpush3.bf16.msra.mxu0 %v5151_v28 }
 0x66c   : > { %4758 = vmatprep.subr.bf16.mxu0 %v5429_v6 }
 0x66e   : > { %4743 = vmatpush3.bf16.msra.mxu1 %v5687_v35 }
 0x66f   : > { %4744 = vmatprep.subr.bf16.mxu1 %v5429_v6 }
 0x672   : > { %4745 = vmatpush3.bf16.msra.mxu1 %v5693_v40 }
 0x673   : > { %4746 = vmatprep.subr.bf16.mxu1 %v5429_v6 }
 0x676   : > { %4747 = vmatpush3.bf16.msra.mxu1 %v5699_v43 }
 0x677   : > { %4764 = vmatprep.subr.bf16.mxu1 %v5429_v6 }
 0x679   : > { %4749 = vmatmul.mubr.msk.bf16.vlgmr.msra.gmra.mxu1 %vm877_vm10, %v5150_v18 }
 0x67a   : > { %4766 = vmatprep.mubr.msk.bf16.mxu1 %vm5430_vm1, %v5429_v6 }
 0x729   : > { %v1720_v35 = vpop.f32.mrf.mxu1 }
 0x72a   : > { %v1727_v40 = vadd.f32 %v1720_v35, %v1619_v8  ;;  %v4251_v8 = vld [vmem:[%s6296_s8 + $0xc] sm:$0x3] }
 0x72b   : > { %v4738_v19 = vpop.f32.mrf.mxu1 }
 0x72d   : > { %v1723_v20 = vpop.f32.mrf.mxu1 }
 0x72e   : > { %v1728_v21 = vadd.f32 %v1723_v20, %v1620_v11  ;;  %v5156_v11 = vld [vmem:[%s6297_s9 + $0x28] sm:$0xff]   ;;  %v5158_v20 = vld [vmem:[%s6297_s9 + $0x38] sm:$0xff]  }
 0x72f   : > { %v4739_v22 = vpop.f32.mrf.mxu1 }
 0x739   : > { %v1774_v23 = vpop.f32.mrf.mxu1 }
 0x73b   : > { %v4750_v24 = vpop.f32.mrf.mxu1 }
 0x73c   : > { %v5159_v24 = vld [vmem:[%s6297_s9 + $0x30] sm:$0xff]  }
 0x73d   : > { %v1777_v43 = vpop.f32.mrf.mxu1 }
 0x73e   : > { %v1781_v25 = vpack.c.bf16 %v1777_v43, %v1774_v23 }
 0x73f   : > { %v4751_v26 = vpop.f32.mrf.mxu1 }
 0x740   : > { %4755 = vmatmul.mubr.msk.bf16.vlgmr.msra.gmra.mxu0 %vm764_vm0, %v1781_v25  ;;  %v5160_v26 = vld [vmem:[%s6297_s9 + $0x48] sm:$0xff]  }
 0x741   : > { %4760 = vmatprep.mubr.msk.bf16.mxu0 %vm5430_vm1, %v5429_v6 }
 0x800   : > { %v1828_v27 = vpop.f32.mrf.mxu0 }
 0x801   : > { %v1835_v30 = vadd.f32 %v1828_v27, %v1727_v40 }
 0x802   : > { %v4756_v31 = vpop.f32.mrf.mxu0 }
 0x803   : > { %v1844_v32 = vadd.f32 %v4199_v29, %v1835_v30  ;;  %v5161_v31 = vld [vmem:[%s6297_s9 + $0x40] sm:$0xff]  }
 0x804   : > { %v1831_v33 = vpop.f32.mrf.mxu0 }
 0x805   : > { %vm1846_vm11 = vcmp.ge.f32.partialorder %v1844_v32, 0.0  ;;  %v1848_v34 = vmul.f32 0.2, %v1844_v32  ;;  %v1836_v36 = vadd.f32 %v1831_v33, %v1728_v21 }
 0x806   : > { %v4757_v37 = vpop.f32.mrf.mxu0 }
 0x807   : > { %v1850_v38 = vsel %vm1846_vm11, %v1844_v32, %v1848_v34  ;;  %v1845_v41 = vadd.f32 %v4199_v29, %v1836_v36  ;;  %v5162_v34 = vld [vmem:[%s6297_s9 + $0x58] sm:$0xff]  }
 0x808   : > { %v1859_v44 = vmul.f32 %v4200_v39, %v1850_v38 }
 0x809   : > { %vm1847_vm12 = vcmp.ge.f32.partialorder %v1845_v41, 0.0  ;;  %v1849_v42 = vmul.f32 0.2, %v1845_v41 }
 0x80a   : > { %v1868_v48 = vadd.f32 %v4201_v45, %v1859_v44  ;;  %v5164_v44 = vld [vmem:[%s6297_s9 + $0x68] sm:$0xff]  }
 0x80b   : > { %v1851_v46 = vsel %vm1847_vm12, %v1845_v41, %v1849_v42 }
 0x80c   : > { %v1860_v47 = vmul.f32 %v4200_v39, %v1851_v46  ;;  %v5163_v39 = vld [vmem:[%s6297_s9 + $0x50] sm:$0xff]  }
 0x80e   : > { %v1869_v49 = vadd.f32 %v4201_v45, %v1860_v47 }
 0x810   : > { %v5860_v50 = vpack.c.bf16 %v1869_v49, %v1868_v48  ;;  %v5165_v48 = vld [vmem:[%s6297_s9 + $0x60] sm:$0xff]  }
 0x812   : > { %4759 = vmatpush3.bf16.msra.mxu0 %v5860_v50  ;;  %4765 = vmatpush3.bf16.msra.mxu1 %v5860_v50 }
 0x813   : > { %4770 = vmatprep.subr.bf16.mxu0 %v5429_v6  ;;  %4778 = vmatprep.subr.bf16.mxu1 %v5429_v6 }
 0x815   : > { %4761 = vmatmul.mubr.msk.bf16.vlgmr.msra.gmra.mxu0 %vm764_vm0, %v1871_v51  ;;  %4767 = vmatmul.mubr.msk.bf16.vlgmr.msra.gmra.mxu1 %vm764_vm0, %v4203_v52  ;;  %v5166_v51 = vld [vmem:[%s6297_s9 + $0x78] sm:$0xff]  }
 0x816   : > { %4771 = vmatpush3.bf16.msra.mxu0 %v5152_v53  ;;  %4779 = vmatpush3.bf16.msra.mxu1 %v5153_v54 }
 0x817   : > { %4772 = vmatprep.subr.bf16.mxu0 %v5429_v6  ;;  %4780 = vmatprep.subr.bf16.mxu1 %v5429_v6 }
 0x818   : > { %4774 = vmatprep.mubr.msk.bf16.mxu0 %vm5430_vm1, %v5429_v6  ;;  %4782 = vmatprep.mubr.msk.bf16.mxu1 %vm5430_vm1, %v5429_v6 }
 0x81a   : > { %4773 = vmatpush3.bf16.msra.mxu0 %v5154_v55  ;;  %4781 = vmatpush3.bf16.msra.mxu1 %v5155_v56  ;;  %v5167_v55 = vld [vmem:[%s6297_s9 + $0x70] sm:$0xff]  }
 0x81b   : > { %4786 = vmatprep.subr.bf16.mxu0 %v5429_v6  ;;  %4792 = vmatprep.subr.bf16.mxu1 %v5429_v6 }
 0x8d5   : > { %v1909_v57 = vpop.f32.mrf.mxu0  ;;  %v1959_v58 = vpop.f32.mrf.mxu1 }
 0x8d6   : > { %v1915_v59 = vpack.c.bf16 %v1909_v57, %v1909_v57  ;;  %v1965_v60 = vpack.c.bf16 %v1959_v58, %v1959_v58  ;;  %v5168_v58 = vld [vmem:[%s6297_s9 + $0x88] sm:$0xff]  }
 0x8d7   : > { %v4768_v61 = vpop.f32.mrf.mxu1  ;;  %v4762_v62 = vpop.f32.mrf.mxu0 }
 0x8d8   : > { %4775 = vmatmul.mubr.msk.bf16.vlgmr.msra.gmra.mxu0 %vm1983_vm13, %v1965_v60  ;;  %4783 = vmatmul.mubr.msk.bf16.vlgmr.msra.gmra.mxu1 %vm1983_vm13, %v1915_v59  ;;  %v5169_v62 = vld [vmem:[%s6297_s9 + $0x80] sm:$0xff]  }
 0x8d9   : > { %4787 = vmatpush3.bf16.msra.mxu0 %v5860_v50  ;;  %v1962_v63 = vpop.f32.mrf.mxu1  ;;  %4788 = vmatprep.mubr.msk.bf16.mxu0 %vm5430_vm1, %v5429_v6  ;;  %v1912_v0 = vpop.f32.mrf.mxu0 }
 0x8da   : > { %4800 = vmatprep.subr.bf16.mxu0 %v5429_v6  ;;  %4796 = vmatprep.mubr.msk.bf16.mxu1 %vm5430_vm1, %v5429_v6 }
 0x8db   : > { %v4769_v1 = vpop.f32.mrf.mxu1  ;;  %v4763_v2 = vpop.f32.mrf.mxu0  ;;  %4793 = vmatpush3.bf16.msra.mxu1 %v5156_v11 }
 0x8dc   : > { %4794 = vmatprep.subr.bf16.mxu1 %v5429_v6 }
 0x8df   : > { %4795 = vmatpush3.bf16.msra.mxu1 %v5157_v12 }
 0x8e0   : > { %4789 = vmatmul.mubr.msk.bf16.vlgmr.msra.gmra.mxu0 %vm764_vm0, %v4215_v3  ;;  %4806 = vmatprep.subr.bf16.mxu1 %v5429_v6 }
 0x8e1   : > { %4801 = vmatpush3.bf16.msra.mxu0 %v5860_v50  ;;  %4802 = vmatprep.mubr.msk.bf16.mxu0 %vm5430_vm1, %v5429_v6 }
 0x8e2   : > { %4814 = vmatprep.subr.bf16.mxu0 %v5429_v6 }
 0x8e8   : > { %4803 = vmatmul.mubr.msk.bf16.vlgmr.msra.gmra.mxu0 %vm764_vm0, %v4224_v4 }
 0x8e9   : > { %4815 = vmatpush3.bf16.msra.mxu0 %v5860_v50  ;;  %4816 = vmatprep.mubr.msk.bf16.mxu0 %vm5430_vm1, %v5429_v6 }
 0x8ea   : > { %4828 = vmatprep.subr.bf16.mxu0 %v5429_v6 }
 0x8f0   : > { %4817 = vmatmul.mubr.msk.bf16.vlgmr.msra.gmra.mxu0 %vm764_vm0, %v4233_v5 }
 0x8f1   : > { %4829 = vmatpush3.bf16.msra.mxu0 %v5860_v50  ;;  %4830 = vmatprep.mubr.msk.bf16.mxu0 %vm5430_vm1, %v5429_v6 }
 0x8f2   : > { %4842 = vmatprep.subr.bf16.mxu0 %v5429_v6 }
 0x8f8   : > { %4831 = vmatmul.mubr.msk.bf16.vlgmr.msra.gmra.mxu0 %vm764_vm0, %v4242_v7 }
 0x8f9   : > { %4843 = vmatpush3.bf16.msra.mxu0 %v5860_v50  ;;  %4844 = vmatprep.mubr.msk.bf16.mxu0 %vm5430_vm1, %v5429_v6 }
 0x8fa   : > { %4856 = vmatprep.subr.bf16.mxu0 %v5429_v6 }
 0x900   : > { %4845 = vmatmul.mubr.msk.bf16.vlgmr.msra.gmra.mxu0 %vm764_vm0, %v4251_v8 }
 0x901   : > { %4857 = vmatpush3.bf16.msra.mxu0 %v5860_v50  ;;  %4858 = vmatprep.mubr.msk.bf16.mxu0 %vm5430_vm1, %v5429_v6 }
 0x902   : > { %4870 = vmatprep.subr.bf16.mxu0 %v5429_v6 }
 0x908   : > { %4859 = vmatmul.mubr.msk.bf16.vlgmr.msra.gmra.mxu0 %vm764_vm0, %v4260_v9 }
 0x909   : > { %4871 = vmatpush3.bf16.msra.mxu0 %v5860_v50  ;;  %4872 = vmatprep.mubr.msk.bf16.mxu0 %vm5430_vm1, %v5429_v6 }
 0x90a   : > { %4884 = vmatprep.subr.bf16.mxu0 %v5429_v6 }
 0x910   : > { %4873 = vmatmul.mubr.msk.bf16.vlgmr.msra.gmra.mxu0 %vm764_vm0, %v4269_v10  ;;  %vm2860_vm0 = vcmask 31744  }
 0x911   : > { %4886 = vmatprep.mubr.msk.bf16.mxu0 %vm5430_vm1, %v5429_v6 }
 0x998   : > { %v2021_v13 = vpop.f32.mrf.mxu0  ;;  %v2076_v14 = vpop.f32.mrf.mxu1 }
 0x999   : > { %v5964_v15 = vadd.f32 %v2076_v14, %v2021_v13 }
 0x99a   : > { %v4776_v16 = vpop.f32.mrf.mxu0  ;;  %v4784_v17 = vpop.f32.mrf.mxu1 }
 0x99c   : > { %v2024_v18 = vpop.f32.mrf.mxu0  ;;  %v2079_v28 = vpop.f32.mrf.mxu1 }
 0x99e   : > { %v4777_v35 = vpop.f32.mrf.mxu0  ;;  %v4785_v40 = vpop.f32.mrf.mxu1 }
 0x9a0   : > { %v2121_v19 = vpop.f32.mrf.mxu0 }
 0x9a1   : > { %v2127_v21 = vpack.c.bf16 %v2121_v19, %v2121_v19 }
 0x9a2   : > { %v4790_v22 = vpop.f32.mrf.mxu0 }
 0x9a3   : > { %4797 = vmatmul.mubr.msk.bf16.vlgmr.msra.gmra.mxu1 %vm1983_vm13, %v2127_v21 }
 0x9a4   : > { %v2124_v23 = vpop.f32.mrf.mxu0  ;;  %4807 = vmatpush3.bf16.msra.mxu1 %v5158_v20  ;;  %4810 = vmatprep.mubr.msk.bf16.mxu1 %vm5430_vm1, %v5429_v6 }
 0x9a5   : > { %4808 = vmatprep.subr.bf16.mxu1 %v5429_v6 }
 0x9a6   : > { %v4791_v43 = vpop.f32.mrf.mxu0 }
 0x9a8   : > { %v2228_v25 = vpop.f32.mrf.mxu0  ;;  %4809 = vmatpush3.bf16.msra.mxu1 %v5159_v24 }
 0x9a9   : > { %v2234_v27 = vpack.c.bf16 %v2228_v25, %v2228_v25  ;;  %4820 = vmatprep.subr.bf16.mxu1 %v5429_v6 }
 0x9aa   : > { %v4804_v29 = vpop.f32.mrf.mxu0 }
 0x9ab   : > { %4811 = vmatmul.mubr.msk.bf16.vlgmr.msra.gmra.mxu1 %vm1983_vm13, %v2234_v27 }
 0x9ac   : > { %v2231_v30 = vpop.f32.mrf.mxu0  ;;  %4821 = vmatpush3.bf16.msra.mxu1 %v5160_v26  ;;  %4824 = vmatprep.mubr.msk.bf16.mxu1 %vm5430_vm1, %v5429_v6 }
 0x9ad   : > { %4822 = vmatprep.subr.bf16.mxu1 %v5429_v6 }
 0x9ae   : > { %v4805_v32 = vpop.f32.mrf.mxu0 }
 0x9b0   : > { %v2335_v33 = vpop.f32.mrf.mxu0  ;;  %4823 = vmatpush3.bf16.msra.mxu1 %v5161_v31 }
 0x9b1   : > { %v2341_v36 = vpack.c.bf16 %v2335_v33, %v2335_v33  ;;  %4834 = vmatprep.subr.bf16.mxu1 %v5429_v6 }
 0x9b2   : > { %v4818_v37 = vpop.f32.mrf.mxu0 }
 0x9b3   : > { %4825 = vmatmul.mubr.msk.bf16.vlgmr.msra.gmra.mxu1 %vm1983_vm13, %v2341_v36  ;;  %v4278_v36 = vld [vmem:[%s6298_s10] ss:$0 sm:$0xff] }
 0x9b4   : > { %v2338_v38 = vpop.f32.mrf.mxu0  ;;  %4835 = vmatpush3.bf16.msra.mxu1 %v5162_v34  ;;  %4838 = vmatprep.mubr.msk.bf16.mxu1 %vm5430_vm1, %v5429_v6 }
 0x9b5   : > { %4836 = vmatprep.subr.bf16.mxu1 %v5429_v6 }
 0x9b6   : > { %v4819_v41 = vpop.f32.mrf.mxu0 }
 0x9b8   : > { %v2442_v42 = vpop.f32.mrf.mxu0  ;;  %4837 = vmatpush3.bf16.msra.mxu1 %v5163_v39 }
 0x9b9   : > { %v2448_v45 = vpack.c.bf16 %v2442_v42, %v2442_v42  ;;  %4848 = vmatprep.subr.bf16.mxu1 %v5429_v6  ;;  %v4279_v42 = vld [vmem:[%s6299_s11] ss:$0 sm:$0xff] }
 0x9ba   : > { %v4832_v46 = vpop.f32.mrf.mxu0 }
 0x9bb   : > { %4839 = vmatmul.mubr.msk.bf16.vlgmr.msra.gmra.mxu1 %vm1983_vm13, %v2448_v45  ;;  %v4280_v46 = vld [vmem:[#allocation7] ss:$0 sm:$0xff] }
 0x9bc   : > { %v2445_v47 = vpop.f32.mrf.mxu0  ;;  %4849 = vmatpush3.bf16.msra.mxu1 %v5164_v44  ;;  %4852 = vmatprep.mubr.msk.bf16.mxu1 %vm5430_vm1, %v5429_v6 }
 0x9bd   : > { %4850 = vmatprep.subr.bf16.mxu1 %v5429_v6 }
 0x9be   : > { %v4833_v49 = vpop.f32.mrf.mxu0 }
 0x9c0   : > { %v2549_v50 = vpop.f32.mrf.mxu0  ;;  %4851 = vmatpush3.bf16.msra.mxu1 %v5165_v48 }
 0x9c1   : > { %v2555_v52 = vpack.c.bf16 %v2549_v50, %v2549_v50  ;;  %4862 = vmatprep.subr.bf16.mxu1 %v5429_v6 }
 0x9c2   : > { %v4846_v53 = vpop.f32.mrf.mxu0 }
 0x9c3   : > { %4853 = vmatmul.mubr.msk.bf16.vlgmr.msra.gmra.mxu1 %vm1983_vm13, %v2555_v52  ;;  %v2859_v52 = vld [vmem:[%s6301_s13] sm:$0x1]  ;;  %v5170_v53 = vld [vmem:[%s6302_s14 + $0x38] sm:$0xff]  }
 0x9c4   : > { %v2552_v54 = vpop.f32.mrf.mxu0  ;;  %4863 = vmatpush3.bf16.msra.mxu1 %v5166_v51  ;;  %4866 = vmatprep.mubr.msk.bf16.mxu1 %vm5430_vm1, %v5429_v6  ;;  %v4282_v51 = vld [vmem:[%s6301_s13 + $0x1] sm:$0x1] }
 0x9c5   : > { %4864 = vmatprep.subr.bf16.mxu1 %v5429_v6  ;;  %v5172_v54 = vld [vmem:[%s6302_s14 + $0x18] sm:$0xff]  }
 0x9c6   : > { %v4847_v56 = vpop.f32.mrf.mxu0 }
 0x9c7   : > { %v5174_v56 = vld [vmem:[%s6302_s14 + $0x10] sm:$0xff]  }
 0x9c8   : > { %v2656_v57 = vpop.f32.mrf.mxu0  ;;  %4865 = vmatpush3.bf16.msra.mxu1 %v5167_v55  ;;  %v5171_v55 = vld [vmem:[%s6302_s14 + $0x30] sm:$0xff]  }
 0x9c9   : > { %v2662_v59 = vpack.c.bf16 %v2656_v57, %v2656_v57  ;;  %4876 = vmatprep.subr.bf16.mxu1 %v5429_v6  ;;  %v5173_v57 = vld [vmem:[%s6302_s14 + $0x28] sm:$0xff]  }
 0x9ca   : > { %v4860_v60 = vpop.f32.mrf.mxu0 }
 0x9cb   : > { %4867 = vmatmul.mubr.msk.bf16.vlgmr.msra.gmra.mxu1 %vm1983_vm13, %v2662_v59  ;;  %v5176_v59 = vld [vmem:[%s6302_s14 + $0x8] sm:$0xff]   ;;  %v5177_v60 = vld [vmem:[%s6302_s14] sm:$0xff]  }
 0x9cc   : > { %v2659_v61 = vpop.f32.mrf.mxu0  ;;  %4877 = vmatpush3.bf16.msra.mxu1 %v5168_v58  ;;  %4880 = vmatprep.mubr.msk.bf16.mxu1 %vm5430_vm1, %v5429_v6  ;;  %v5175_v58 = vld [vmem:[%s6302_s14 + $0x20] sm:$0xff]  }
 0x9cd   : > { %4878 = vmatprep.subr.bf16.mxu1 %v5429_v6 }
 0x9ce   : > { %v4861_v63 = vpop.f32.mrf.mxu0 }
 0x9d0   : > { %v2763_v0 = vpop.f32.mrf.mxu0  ;;  %4879 = vmatpush3.bf16.msra.mxu1 %v5169_v62 }
 0x9d1   : > { %v2769_v1 = vpack.c.bf16 %v2763_v0, %v2763_v0  ;;  %4890 = vmatprep.subr.bf16.mxu1 %v5429_v6 }
 0x9d2   : > { %v4874_v2 = vpop.f32.mrf.mxu0 }
 0x9d3   : > { %4881 = vmatmul.mubr.msk.bf16.vlgmr.msra.gmra.mxu1 %vm1983_vm13, %v2769_v1  ;;  %v5178_v1 = vld [vmem:[%s6302_s14 + $0x58] sm:$0xff]  }
 0x9d4   : > { %v2766_v3 = vpop.f32.mrf.mxu0  ;;  %4892 = vmatprep.mubr.msk.bf16.mxu1 %vm5430_vm1, %v5429_v6 }
 0x9d6   : > { %v4875_v4 = vpop.f32.mrf.mxu0 }
 0xa63   : > { %v2182_v5 = vpop.f32.mrf.mxu1 }
 0xa64   : > { %v2188_v23 = vadd.f32 %v2182_v5, %v5964_v15 }
 0xa65   : > { %v4798_v7 = vpop.f32.mrf.mxu1 }
 0xa66   : > { %v5179_v7 = vld [vmem:[%s6302_s14 + $0x50] sm:$0xff]  }
 0xa67   : > { %v2185_v8 = vpop.f32.mrf.mxu1 }
 0xa69   : > { %v4799_v9 = vpop.f32.mrf.mxu1 }
 0xa6b   : > { %v2289_v10 = vpop.f32.mrf.mxu1 }
 0xa6c   : > { %v2295_v43 = vadd.f32 %v2289_v10, %v2188_v23  ;;  %v4302_v10 = vld [vmem:[%s6301_s13 + $0x2] sm:$0x1] }
 0xa6d   : > { %v4812_v11 = vpop.f32.mrf.mxu1 }
 0xa6e   : > { %v4317_v11 = vld [vmem:[%s6301_s13 + $0x3] sm:$0x1] }
 0xa6f   : > { %v2292_v12 = vpop.f32.mrf.mxu1 }
 0xa70   : > { %v5180_v12 = vld [vmem:[%s6302_s14 + $0x48] sm:$0xff]  }
 0xa71   : > { %v4813_v13 = vpop.f32.mrf.mxu1 }
 0xa72   : > { %v5181_v13 = vld [vmem:[%s6302_s14 + $0x78] sm:$0xff]  }
 0xa73   : > { %v2396_v14 = vpop.f32.mrf.mxu1 }
 0xa74   : > { %v2402_v26 = vadd.f32 %v2396_v14, %v2295_v43  ;;  %v5182_v14 = vld [vmem:[%s6302_s14 + $0x40] sm:$0xff]  }
 0xa75   : > { %v4826_v16 = vpop.f32.mrf.mxu1 }
 0xa76   : > { %v5183_v16 = vld [vmem:[%s6302_s14 + $0x70] sm:$0xff]  }
 0xa77   : > { %v2399_v17 = vpop.f32.mrf.mxu1 }
 0xa78   : > { %v5184_v17 = vld [vmem:[%s6302_s14 + $0x68] sm:$0xff]  }
 0xa79   : > { %v4827_v18 = vpop.f32.mrf.mxu1 }
 0xa7a   : > { %v5185_v18 = vld [vmem:[%s6302_s14 + $0x60] sm:$0xff]  }
 0xa7b   : > { %v2503_v28 = vpop.f32.mrf.mxu1 }
 0xa7c   : > { %v2509_v29 = vadd.f32 %v2503_v28, %v2402_v26 }
 0xa7d   : > { %v4840_v35 = vpop.f32.mrf.mxu1 }
 0xa7f   : > { %v2506_v40 = vpop.f32.mrf.mxu1 }
 0xa81   : > { %v4841_v19 = vpop.f32.mrf.mxu1 }
 0xa83   : > { %v2610_v20 = vpop.f32.mrf.mxu1 }
 0xa84   : > { %v2616_v31 = vadd.f32 %v2610_v20, %v2509_v29 }
 0xa85   : > { %v4854_v21 = vpop.f32.mrf.mxu1 }
 0xa87   : > { %v2613_v22 = vpop.f32.mrf.mxu1 }
 0xa89   : > { %v4855_v24 = vpop.f32.mrf.mxu1 }
 0xa8b   : > { %v2717_v25 = vpop.f32.mrf.mxu1 }
 0xa8c   : > { %v2723_v33 = vadd.f32 %v2717_v25, %v2616_v31  ;;  %v4332_v31 = vld [vmem:[%s6301_s13 + $0x4] sm:$0x1] }
 0xa8d   : > { %v4868_v27 = vpop.f32.mrf.mxu1 }
 0xa8f   : > { %v2720_v30 = vpop.f32.mrf.mxu1 }
 0xa91   : > { %v4869_v32 = vpop.f32.mrf.mxu1 }
 0xa93   : > { %v2824_v34 = vpop.f32.mrf.mxu1 }
 0xa94   : > { %v2830_v37 = vadd.f32 %v2824_v34, %v2723_v33  ;;  %v5186_v33 = vld [vmem:[%s6302_s14 + $0x98] sm:$0xff]  }
 0xa95   : > { %v4882_v38 = vpop.f32.mrf.mxu1 }
 0xa96   : > { %v2838_v39 = vadd.f32 %v4278_v36, %v2830_v37  ;;  %v5187_v37 = vld [vmem:[%s6302_s14 + $0x90] sm:$0xff]  }
 0xa97   : > { %v2827_v41 = vpop.f32.mrf.mxu1 }
 0xa98   : > { %vm2839_vm14 = vcmp.ge.f32.partialorder %v2838_v39, 0.0  ;;  %v2840_v15 = vmul.f32 0.2, %v2838_v39  ;;  %v5188_v41 = vld [vmem:[%s6302_s14 + $0x88] sm:$0xff]  }
 0xa99   : > { %v4883_v44 = vpop.f32.mrf.mxu1 }
 0xa9a   : > { %v2841_v45 = vsel %vm2839_vm14, %v2838_v39, %v2840_v15  ;;  %v4347_v39 = vld [vmem:[%s6301_s13 + $0x5] sm:$0x1]  ;;  %v5189_v15 = vld [vmem:[%s6302_s14 + $0xb8] sm:$0xff]   ;;  %v5191_v44 = vld [vmem:[%s6302_s14 + $0xb0] sm:$0xff]  }
 0xa9b   : > { %v2849_v47 = vmul.f32 %v4279_v42, %v2841_v45  ;;  %v5190_v42 = vld [vmem:[%s6302_s14 + $0x80] sm:$0xff]   ;;  %v5192_v45 = vld [vmem:[%s6302_s14 + $0xa8] sm:$0xff]  }
 0xa9d   : > { %v2857_v48 = vadd.f32 %v4280_v46, %v2849_v47  ;;  %v5193_v46 = vld [vmem:[%s6302_s14 + $0xa0] sm:$0xff]  }
 0xa9f   : > { %v2858_v49 = vpack.c.bf16 %v2857_v48, %v2857_v48 }
 0xaa1   : > { %v6042_v50 = vsel %vm2864_vm15, %v2858_v49, 0 }
 0xaa2   : > { %4885 = vmatpush3.bf16.msra.mxu0 %v6042_v50  ;;  %4891 = vmatpush3.bf16.msra.mxu1 %v6042_v50 }
 0xaa3   : > { %4896 = vmatprep.subr.bf16.mxu0 %v5429_v6  ;;  %4908 = vmatprep.subr.bf16.mxu1 %v5429_v6 }
 0xaa5   : > { %4893 = vmatmul.mubr.msk.bf16.vlgmr.msra.gmra.mxu1 %vm2860_vm0, %v4282_v51  ;;  %4887 = vmatmul.mubr.msk.bf16.vlgmr.msra.gmra.mxu0 %vm2860_vm0, %v2859_v52 }
 0xaa6   : > { %4897 = vmatpush3.bf16.msra.mxu0 %v5170_v53  ;;  %4909 = vmatpush3.bf16.msra.mxu1 %v5172_v54 }
 0xaa7   : > { %4898 = vmatprep.subr.bf16.mxu0 %v5429_v6  ;;  %4910 = vmatprep.subr.bf16.mxu1 %v5429_v6 }
 0xaa8   : > { %4904 = vmatprep.mubr.msk.bf16.mxu0 %vm5430_vm1, %v5429_v6  ;;  %4916 = vmatprep.mubr.msk.bf16.mxu1 %vm5430_vm1, %v5429_v6 }
 0xaaa   : > { %4899 = vmatpush3.bf16.msra.mxu0 %v5171_v55  ;;  %4911 = vmatpush3.bf16.msra.mxu1 %v5174_v56 }
 0xaab   : > { %4900 = vmatprep.subr.bf16.mxu0 %v5429_v6  ;;  %4912 = vmatprep.subr.bf16.mxu1 %v5429_v6 }
 0xaae   : > { %4901 = vmatpush3.bf16.msra.mxu0 %v5173_v57  ;;  %4913 = vmatpush3.bf16.msra.mxu1 %v5176_v59 }
 0xaaf   : > { %4902 = vmatprep.subr.bf16.mxu0 %v5429_v6  ;;  %4914 = vmatprep.subr.bf16.mxu1 %v5429_v6 }
 0xab2   : > { %4903 = vmatpush3.bf16.msra.mxu0 %v5175_v58  ;;  %4915 = vmatpush3.bf16.msra.mxu1 %v5177_v60 }
 0xab3   : > { %4920 = vmatprep.subr.bf16.mxu0 %v5429_v6  ;;  %4926 = vmatprep.subr.bf16.mxu1 %v5429_v6 }
 0xb65   : > { %v2956_v61 = vpop.f32.mrf.mxu1  ;;  %v2902_v62 = vpop.f32.mrf.mxu0 }
 0xb66   : > { %v2962_v63 = vpack.c.bf16 %v2956_v61, %v2956_v61  ;;  %v2908_v0 = vpack.c.bf16 %v2902_v62, %v2902_v62 }
 0xb67   : > { %v4894_v2 = vpop.f32.mrf.mxu1  ;;  %v4888_v3 = vpop.f32.mrf.mxu0 }
 0xb68   : > { %4905 = vmatmul.mubr.msk.bf16.vlgmr.msra.gmra.mxu0 %vm877_vm10, %v2962_v63  ;;  %4917 = vmatmul.mubr.msk.bf16.vlgmr.msra.gmra.mxu1 %vm877_vm10, %v2908_v0  ;;  %v4362_v0 = vld [vmem:[%s6301_s13 + $0x6] sm:$0x1]  ;;  %v5194_v2 = vld [vmem:[%s6302_s14 + $0xd8] sm:$0xff]  }
 0xb69   : > { %4921 = vmatpush3.bf16.msra.mxu0 %v6042_v50  ;;  %v2959_v4 = vpop.f32.mrf.mxu1  ;;  %4922 = vmatprep.mubr.msk.bf16.mxu0 %vm5430_vm1, %v5429_v6  ;;  %v2905_v5 = vpop.f32.mrf.mxu0 }
 0xb6a   : > { %4938 = vmatprep.subr.bf16.mxu0 %v5429_v6  ;;  %4927 = vmatpush3.bf16.msra.mxu1 %v5178_v1  ;;  %v5195_v5 = vld [vmem:[%s6302_s14 + $0xd0] sm:$0xff]  }
 0xb6b   : > { %v4895_v8 = vpop.f32.mrf.mxu1  ;;  %v4889_v9 = vpop.f32.mrf.mxu0  ;;  %4928 = vmatprep.subr.bf16.mxu1 %v5429_v6  ;;  %4934 = vmatprep.mubr.msk.bf16.mxu1 %vm5430_vm1, %v5429_v6 }
 0xb6c   : > { %v4377_v8 = vld [vmem:[%s6301_s13 + $0x7] sm:$0x1]  ;;  %v5196_v9 = vld [vmem:[%s6302_s14 + $0xc8] sm:$0xff]  }
 0xb6e   : > { %4929 = vmatpush3.bf16.msra.mxu1 %v5179_v7 }
 0xb6f   : > { %4930 = vmatprep.subr.bf16.mxu1 %v5429_v6 }
 0xb70   : > { %4923 = vmatmul.mubr.msk.bf16.vlgmr.msra.gmra.mxu0 %vm2860_vm0, %v4302_v10  ;;  %v5197_v10 = vld [vmem:[%s6302_s14 + $0xf8] sm:$0xff]  }
 0xb71   : > { %4939 = vmatpush3.bf16.msra.mxu0 %v6042_v50  ;;  %4940 = vmatprep.mubr.msk.bf16.mxu0 %vm5430_vm1, %v5429_v6 }
 0xb72   : > { %4944 = vmatprep.subr.bf16.mxu0 %v5429_v6  ;;  %4931 = vmatpush3.bf16.msra.mxu1 %v5180_v12  ;;  %v5199_v12 = vld [vmem:[%s6302_s14 + $0xf0] sm:$0xff]  }
 0xb73   : > { %4932 = vmatprep.subr.bf16.mxu1 %v5429_v6 }
 0xb76   : > { %4933 = vmatpush3.bf16.msra.mxu1 %v5182_v14  ;;  %v5201_v14 = vld [vmem:[%s6302_s14 + $0xe0] sm:$0xff]  }
 0xb77   : > { %4956 = vmatprep.subr.bf16.mxu1 %v5429_v6 }
 0xb78   : > { %4941 = vmatmul.mubr.msk.bf16.vlgmr.msra.gmra.mxu0 %vm2860_vm0, %v4317_v11  ;;  %v5198_v11 = vld [vmem:[%s6302_s14 + $0xc0] sm:$0xff]  }
 0xb79   : > { %4952 = vmatprep.mubr.msk.bf16.mxu0 %vm5430_vm1, %v5429_v6  ;;  %4945 = vmatpush3.bf16.msra.mxu0 %v5181_v13  ;;  %v5200_v13 = vld [vmem:[%s6302_s14 + $0xe8] sm:$0xff]  }
 0xb7a   : > { %4946 = vmatprep.subr.bf16.mxu0 %v5429_v6 }
 0xb7d   : > { %4947 = vmatpush3.bf16.msra.mxu0 %v5183_v16 }
 0xb7e   : > { %4948 = vmatprep.subr.bf16.mxu0 %v5429_v6 }
 0xb81   : > { %4949 = vmatpush3.bf16.msra.mxu0 %v5184_v17 }
 0xb82   : > { %4950 = vmatprep.subr.bf16.mxu0 %v5429_v6 }
 0xb85   : > { %4951 = vmatpush3.bf16.msra.mxu0 %v5185_v18 }
 0xb86   : > { %4974 = vmatprep.subr.bf16.mxu0 %v5429_v6 }
 0xc28   : > { %v3033_v28 = vpop.f32.mrf.mxu0  ;;  %v3100_v35 = vpop.f32.mrf.mxu1 }
 0xc29   : > { %v3101_v40 = vadd.f32 %v3100_v35, %v3033_v28 }
 0xc2a   : > { %v4906_v19 = vpop.f32.mrf.mxu0  ;;  %v4918_v20 = vpop.f32.mrf.mxu1 }
 0xc2c   : > { %v3036_v21 = vpop.f32.mrf.mxu0  ;;  %v3103_v22 = vpop.f32.mrf.mxu1 }
 0xc2e   : > { %v4907_v23 = vpop.f32.mrf.mxu0  ;;  %v4919_v24 = vpop.f32.mrf.mxu1 }
 0xc30   : > { %v3145_v43 = vpop.f32.mrf.mxu0 }
 0xc31   : > { %v3151_v25 = vpack.c.bf16 %v3145_v43, %v3145_v43 }
 0xc32   : > { %v4924_v26 = vpop.f32.mrf.mxu0 }
 0xc33   : > { %4935 = vmatmul.mubr.msk.bf16.vlgmr.msra.gmra.mxu1 %vm877_vm10, %v3151_v25 }
 0xc34   : > { %4957 = vmatpush3.bf16.msra.mxu1 %v6042_v50  ;;  %v3148_v27 = vpop.f32.mrf.mxu0  ;;  %4958 = vmatprep.mubr.msk.bf16.mxu1 %vm5430_vm1, %v5429_v6 }
 0xc35   : > { %4962 = vmatprep.subr.bf16.mxu1 %v5429_v6 }
 0xc36   : > { %v4925_v29 = vpop.f32.mrf.mxu0 }
 0xc37   : > { %v4392_v29 = vld [vmem:[%s6301_s13 + $0x8] sm:$0x1] }
 0xc38   : > { %v3268_v30 = vpop.f32.mrf.mxu0 }
 0xc39   : > { %v3274_v32 = vpack.c.bf16 %v3268_v30, %v3268_v30  ;;  %v5202_v30 = vld [vmem:[%s6302_s14 + $0x118] sm:$0xff]  }
 0xc3a   : > { %v4942_v34 = vpop.f32.mrf.mxu0 }
 0xc3b   : > { %4953 = vmatmul.mubr.msk.bf16.vlgmr.msra.gmra.mxu0 %vm877_vm10, %v3274_v32  ;;  %4959 = vmatmul.mubr.msk.bf16.vlgmr.msra.gmra.mxu1 %vm2860_vm0, %v4332_v31  ;;  %v5203_v34 = vld [vmem:[%s6302_s14 + $0x110] sm:$0xff]  }
 0xc3c   : > { %4975 = vmatpush3.bf16.msra.mxu0 %v6042_v50  ;;  %4976 = vmatprep.mubr.msk.bf16.mxu0 %vm5430_vm1, %v5429_v6  ;;  %v3271_v36 = vpop.f32.mrf.mxu0 }
 0xc3d   : > { %4963 = vmatpush3.bf16.msra.mxu1 %v5186_v33  ;;  %4980 = vmatprep.subr.bf16.mxu0 %v5429_v6  ;;  %v5204_v36 = vld [vmem:[%s6302_s14 + $0x108] sm:$0xff]  }
 0xc3e   : > { %4964 = vmatprep.subr.bf16.mxu1 %v5429_v6  ;;  %v4943_v38 = vpop.f32.mrf.mxu0  ;;  %4970 = vmatprep.mubr.msk.bf16.mxu1 %vm5430_vm1, %v5429_v6 }
 0xc41   : > { %4965 = vmatpush3.bf16.msra.mxu1 %v5187_v37  ;;  %v5205_v37 = vld [vmem:[%s6302_s14 + $0x100] sm:$0xff]  }
 0xc42   : > { %4966 = vmatprep.subr.bf16.mxu1 %v5429_v6 }
 0xc43   : > { %4977 = vmatmul.mubr.msk.bf16.vlgmr.msra.gmra.mxu0 %vm2860_vm0, %v4347_v39 }
 0xc44   : > { %4988 = vmatprep.mubr.msk.bf16.mxu0 %vm5430_vm1, %v5429_v6  ;;  %4981 = vmatpush3.bf16.msra.mxu0 %v5189_v15 }
 0xc45   : > { %4967 = vmatpush3.bf16.msra.mxu1 %v5188_v41  ;;  %4982 = vmatprep.subr.bf16.mxu0 %v5429_v6 }
 0xc46   : > { %4968 = vmatprep.subr.bf16.mxu1 %v5429_v6 }
 0xc48   : > { %4983 = vmatpush3.bf16.msra.mxu0 %v5191_v44 }
 0xc49   : > { %4969 = vmatpush3.bf16.msra.mxu1 %v5190_v42  ;;  %4984 = vmatprep.subr.bf16.mxu0 %v5429_v6 }
 0xc4a   : > { %4992 = vmatprep.subr.bf16.mxu1 %v5429_v6 }
 0xc4c   : > { %4985 = vmatpush3.bf16.msra.mxu0 %v5192_v45 }
 0xc4d   : > { %4986 = vmatprep.subr.bf16.mxu0 %v5429_v6 }
 0xc50   : > { %4987 = vmatpush3.bf16.msra.mxu0 %v5193_v46 }
 0xc51   : > { %5010 = vmatprep.subr.bf16.mxu0 %v5429_v6 }
 0xcf3   : > { %v3222_v47 = vpop.f32.mrf.mxu1 }
 0xcf4   : > { %v3228_v48 = vadd.f32 %v3222_v47, %v3101_v40 }
 0xcf5   : > { %v4936_v49 = vpop.f32.mrf.mxu1 }
 0xcf7   : > { %v3225_v51 = vpop.f32.mrf.mxu1 }
 0xcf9   : > { %v4937_v52 = vpop.f32.mrf.mxu1 }
 0xcfb   : > { %v3345_v53 = vpop.f32.mrf.mxu0  ;;  %v3391_v54 = vpop.f32.mrf.mxu1 }
 0xcfc   : > { %v3351_v55 = vadd.f32 %v3345_v53, %v3228_v48  ;;  %v3397_v56 = vpack.c.bf16 %v3391_v54, %v3391_v54 }
 0xcfd   : > { %v4954_v57 = vpop.f32.mrf.mxu0  ;;  %v4960_v58 = vpop.f32.mrf.mxu1 }
 0xcfe   : > { %4971 = vmatmul.mubr.msk.bf16.vlgmr.msra.gmra.mxu1 %vm877_vm10, %v3397_v56 }
 0xcff   : > { %4993 = vmatpush3.bf16.msra.mxu1 %v6042_v50  ;;  %v3348_v59 = vpop.f32.mrf.mxu0  ;;  %v3394_v60 = vpop.f32.mrf.mxu1  ;;  %4994 = vmatprep.mubr.msk.bf16.mxu1 %vm5430_vm1, %v5429_v6 }
 0xd00   : > { %4998 = vmatprep.subr.bf16.mxu1 %v5429_v6 }
 0xd01   : > { %v4955_v61 = vpop.f32.mrf.mxu0  ;;  %v4961_v62 = vpop.f32.mrf.mxu1 }
 0xd02   : > { %v3972_v61 = vld [vmem:[#allocation10] sm:$0x1] }
 0xd03   : > { %v3514_v63 = vpop.f32.mrf.mxu0 }
 0xd04   : > { %v3520_v1 = vpack.c.bf16 %v3514_v63, %v3514_v63 }
 0xd05   : > { %v4978_v3 = vpop.f32.mrf.mxu0 }
 0xd06   : > { %4989 = vmatmul.mubr.msk.bf16.vlgmr.msra.gmra.mxu0 %vm877_vm10, %v3520_v1  ;;  %4995 = vmatmul.mubr.msk.bf16.vlgmr.msra.gmra.mxu1 %vm2860_vm0, %v4362_v0  ;;  %v3974_v0 = vld [vmem:[#allocation11] sm:$0x1] }
 0xd07   : > { %5011 = vmatpush3.bf16.msra.mxu0 %v6042_v50  ;;  %5012 = vmatprep.mubr.msk.bf16.mxu0 %vm5430_vm1, %v5429_v6  ;;  %v3517_v4 = vpop.f32.mrf.mxu0 }
 0xd08   : > { %4999 = vmatpush3.bf16.msra.mxu1 %v5194_v2  ;;  %5016 = vmatprep.subr.bf16.mxu0 %v5429_v6  ;;  %v3976_v2 = vld [vmem:[#allocation13] sm:$0x1] }
 0xd09   : > { %5000 = vmatprep.subr.bf16.mxu1 %v5429_v6  ;;  %v4979_v7 = vpop.f32.mrf.mxu0  ;;  %5006 = vmatprep.mubr.msk.bf16.mxu1 %vm5430_vm1, %v5429_v6 }
 0xd0a   : > { %v3983_v7 = vld [vmem:[#allocation2] sm:$0x1] }
 0xd0c   : > { %5001 = vmatpush3.bf16.msra.mxu1 %v5195_v5 }
 0xd0d   : > { %5002 = vmatprep.subr.bf16.mxu1 %v5429_v6 }
 0xd0e   : > { %5013 = vmatmul.mubr.msk.bf16.vlgmr.msra.gmra.mxu0 %vm2860_vm0, %v4377_v8 }
 0xd0f   : > { %5024 = vmatprep.mubr.msk.bf16.mxu0 %vm5430_vm1, %v5429_v6  ;;  %5017 = vmatpush3.bf16.msra.mxu0 %v5197_v10 }
 0xd10   : > { %5003 = vmatpush3.bf16.msra.mxu1 %v5196_v9  ;;  %5018 = vmatprep.subr.bf16.mxu0 %v5429_v6 }
 0xd11   : > { %5004 = vmatprep.subr.bf16.mxu1 %v5429_v6 }
 0xd13   : > { %5019 = vmatpush3.bf16.msra.mxu0 %v5199_v12 }
 0xd14   : > { %5005 = vmatpush3.bf16.msra.mxu1 %v5198_v11  ;;  %5020 = vmatprep.subr.bf16.mxu0 %v5429_v6 }
 0xd15   : > { %5028 = vmatprep.subr.bf16.mxu1 %v5429_v6 }
 0xd17   : > { %5021 = vmatpush3.bf16.msra.mxu0 %v5200_v13 }
 0xd18   : > { %5022 = vmatprep.subr.bf16.mxu0 %v5429_v6 }
 0xd1b   : > { %5023 = vmatpush3.bf16.msra.mxu0 %v5201_v14 }
 0xdbe   : > { %v3468_v16 = vpop.f32.mrf.mxu1 }
 0xdbf   : > { %v3474_v17 = vadd.f32 %v3468_v16, %v3351_v55  ;;  %v3967_v55 = vld [vmem:[#allocation8] sm:$0x1] }
 0xdc0   : > { %v4972_v18 = vpop.f32.mrf.mxu1 }
 0xdc2   : > { %v3471_v28 = vpop.f32.mrf.mxu1 }
 0xdc4   : > { %v4973_v35 = vpop.f32.mrf.mxu1 }
 0xdc6   : > { %v3591_v40 = vpop.f32.mrf.mxu0  ;;  %v3637_v19 = vpop.f32.mrf.mxu1 }
 0xdc7   : > { %v3597_v20 = vadd.f32 %v3591_v40, %v3474_v17  ;;  %v3643_v21 = vpack.c.bf16 %v3637_v19, %v3637_v19 }
 0xdc8   : > { %v4990_v22 = vpop.f32.mrf.mxu0  ;;  %v4996_v23 = vpop.f32.mrf.mxu1 }
 0xdc9   : > { %5007 = vmatmul.mubr.msk.bf16.vlgmr.msra.gmra.mxu1 %vm877_vm10, %v3643_v21 }
 0xdca   : > { %5029 = vmatpush3.bf16.msra.mxu1 %v6042_v50  ;;  %v3594_v24 = vpop.f32.mrf.mxu0  ;;  %v3640_v43 = vpop.f32.mrf.mxu1  ;;  %5030 = vmatprep.mubr.msk.bf16.mxu1 %vm5430_vm1, %v5429_v6 }
 0xdcb   : > { %5034 = vmatprep.subr.bf16.mxu1 %v5429_v6 }
 0xdcc   : > { %v4991_v25 = vpop.f32.mrf.mxu0  ;;  %v4997_v26 = vpop.f32.mrf.mxu1 }
 0xdce   : > { %v3760_v27 = vpop.f32.mrf.mxu0 }
 0xdcf   : > { %v3766_v31 = vpack.c.bf16 %v3760_v27, %v3760_v27 }
 0xdd0   : > { %v5014_v50 = vpop.f32.mrf.mxu0 }
 0xdd1   : > { %5025 = vmatmul.mubr.msk.bf16.vlgmr.msra.gmra.mxu0 %vm877_vm10, %v3766_v31  ;;  %5031 = vmatmul.mubr.msk.bf16.vlgmr.msra.gmra.mxu1 %vm2860_vm0, %v4392_v29 }
 0xdd2   : > { %5035 = vmatpush3.bf16.msra.mxu1 %v5202_v30  ;;  %v3763_v32 = vpop.f32.mrf.mxu0  ;;  %5042 = vmatprep.mubr.msk.bf16.mxu1 %vm5430_vm1, %v5429_v6 }
 0xdd3   : > { %5036 = vmatprep.subr.bf16.mxu1 %v5429_v6 }
 0xdd4   : > { %v5015_v33 = vpop.f32.mrf.mxu0 }
 0xdd6   : > { %5037 = vmatpush3.bf16.msra.mxu1 %v5203_v34 }
 0xdd7   : > { %5038 = vmatprep.subr.bf16.mxu1 %v5429_v6 }
 0xdda   : > { %5039 = vmatpush3.bf16.msra.mxu1 %v5204_v36 }
 0xddb   : > { %5040 = vmatprep.subr.bf16.mxu1 %v5429_v6 }
 0xdde   : > { %5041 = vmatpush3.bf16.msra.mxu1 %v5205_v37 }
 0xe89   : > { %v3714_v38 = vpop.f32.mrf.mxu1 }
 0xe8a   : > { %v3720_v39 = vadd.f32 %v3714_v38, %v3597_v20 }
 0xe8b   : > { %v5008_v41 = vpop.f32.mrf.mxu1 }
 0xe8d   : > { %v3717_v15 = vpop.f32.mrf.mxu1 }
 0xe8f   : > { %v5009_v42 = vpop.f32.mrf.mxu1 }
 0xe91   : > { %v3837_v44 = vpop.f32.mrf.mxu0  ;;  %v3883_v45 = vpop.f32.mrf.mxu1 }
 0xe92   : > { %v3843_v46 = vadd.f32 %v3837_v44, %v3720_v39  ;;  %v3889_v47 = vpack.c.bf16 %v3883_v45, %v3883_v45 }
 0xe93   : > { %v5032_v48 = vpop.f32.mrf.mxu1  ;;  %v5026_v49 = vpop.f32.mrf.mxu0 }
 0xe94   : > { %5043 = vmatmul.mubr.msk.bf16.vlgmr.msra.gmra.mxu1 %vm877_vm10, %v3889_v47 }
 0xe95   : > { %v3886_v51 = vpop.f32.mrf.mxu1  ;;  %v3840_v6 = vpop.f32.mrf.mxu0 }
 0xe97   : > { %v5033_v52 = vpop.f32.mrf.mxu1  ;;  %v5027_v53 = vpop.f32.mrf.mxu0 }
 0xf54   : > { %v3960_v54 = vpop.f32.mrf.mxu1 }
 0xf55   : > { %v3966_v56 = vadd.f32 %v3960_v54, %v3843_v46 }
 0xf56   : > { %v5044_v57 = vpop.f32.mrf.mxu1 }
 0xf57   : > { %v3968_v58 = vadd.f32 %v3967_v55, %v3966_v56 }
 0xf58   : > { %v3963_v59 = vpop.f32.mrf.mxu1 }
 0xf59   : > { %vm3969_vm1 = vcmp.ge.f32.partialorder %v3968_v58, 0.0  ;;  %v3970_v60 = vmul.f32 0.2, %v3968_v58 }
 0xf5a   : > { %v5045_v62 = vpop.f32.mrf.mxu1 }
 0xf5b   : > { %v3971_v63 = vsel %vm3969_vm1, %v3968_v58, %v3970_v60 }
 0xf5c   : > { %v3973_v1 = vmul.f32 %v3972_v61, %v3971_v63 }
 0xf5e   : > { %v3975_v3 = vadd.f32 %v3974_v0, %v3973_v1 }
 0xf60   : > { %v3977_v4 = vmul.f32 %v3976_v2, %v3975_v3 }
 0xf62   : > { %v3979_v5 = vsel %vm3978_vm2, %v3977_v4, 0.0 }
 0xf63   : > { %3980 = vadd.xlane.f32.xlu0 %v3979_v5 }
 0xfec   : > { %v3981_v8 = vpop.xlane.xlu0 %3980 }
 0xfed   : > { %v3984_v9 = vadd.f32 %v3983_v7, %v3981_v8 }
 0xfef   : > { %v3985_v10 = vsub.f32 0.0, %v3984_v9  ;;  %v3991_v11 = vmul.f32 1.442695, %v3984_v9  ;;  %vm3996_vm4 = vcmp.ge.f32.partialorder %v3984_v9, 0.0 }
 0xff1   : > { %v3986_v12 = vmul.f32 1.442695, %v3985_v10  ;;  %5206 = vpow2.f32 %v3991_v11 }
 0xff3   : > { %5208 = vpow2.f32 %v3986_v12 }
 0xffe   : > { %v5207_v13 = vpop.eup %5206 }
 0xfff   : > { %v3993_v14 = vadd.f32 1.0, %v5207_v13 }
0x1000   : > { %v5209_v16 = vpop.eup %5208 }
0x1001   : > { %v3988_v17 = vadd.f32 1.0, %v5209_v16  ;;  %5210 = vrcp.f32 %v3993_v14 }
0x1003   : > { %5212 = vrcp.f32 %v3988_v17 }
0x100e   : > { %v5211_v18 = vpop.eup %5210 }
0x100f   : > { %v3995_v28 = vmul.f32 %v5211_v18, %v5207_v13 }
0x1010   : > { %v5213_v35 = vpop.eup %5212 }
0x1011   : > { %v3997_v40 = vsel %vm3996_vm4, %v5213_v35, %v3995_v28 }
0x1012   : > { %3999 = vst.msk [vmem:[%s719_s2] sm:$0x1] %vm3998_vm3, %v3997_v40 }
0x1013 PF: > { %s6336_s26 = sld [smem:[#allocation18_spill]] }
0x1019   : > { %s36_s23 = sadd.s32 1, %s6336_s26  }
0x101a   : > { %p33_p10 = scmp.ge.s32.totalorder %s36_s23, 4  }
0x101c   :  { %35 = sbr.rel (!%p33_p10) target bundleno = 11 (0xb), region = 207 }
0x1021   :  { %4017 = vsyncpa [#allocation4], 1 }
0x1022   :  { %4019 = vsyncpa [#allocation4 + $0x1], 1 }
0x1023   :  { %4020 = vsyncpa [#allocation6], 1 }
0x1024   :  { %4021 = vsyncpa [#allocation9], 1 }
0x1025   :  { %4022 = vsyncpa [#allocation12], 1 }

</bundles_post_ra>
